<compile_context>
chip_gen: v7x
topology: tpu7x:2x2x1
jax: 0.10.0
libtpu: 0.0.40
codegen_flags: <defaults>
</compile_context>

<pallas_src>
import functools
import re

import jax
import jax.numpy as jnp
from jax.experimental import pallas as pl
from jax.experimental.pallas import tpu as pltpu

LANES = 128
SUBLANES = 8

_TARGET_BLOCK_BYTES = 6 * 1024 * 1024   # ~6 MiB blocks: DMA time >> ~0.35us/step overhead
_MIN_BLOCK_BYTES = 1 * 1024 * 1024      # block floor when splitting for megacore
_VMEM_LIMIT_BYTES = 48 * 1024 * 1024    # explicit scoped-VMEM limit (safe on v5e/v6e/v7x)
_BYPASS_BYTES = 256 * 1024              # tiny tensors: plain XLA beats kernel launch cost


def _round_up(a: int, b: int) -> int:
    return ((a + b - 1) // b) * b


def _chip_generation() -> int:
    """Best-effort TPU generation from device_kind (e.g. 'TPU v6e' -> 6)."""
    try:
        kind = jax.devices()[0].device_kind
        m = re.search(r"(\d+)", kind)
        return int(m.group(1)) if m else 0
    except Exception:
        return 0


def _swish_jnp(x):
    """Plain-XLA swish (tiny-input bypass and <128-element tails)."""
    xf = x.astype(jnp.float32)
    return (xf * jax.nn.sigmoid(xf)).astype(x.dtype)


def _swish_kernel(x_ref, o_ref, *, compute_dtype):
    x = x_ref[...].astype(compute_dtype)
    # x * sigmoid(x) == 0.5 * x * (tanh(x/2) + 1): a single EUP transcendental.
    y = 0.5 * x * (jnp.tanh(0.5 * x) + 1.0)
    o_ref[...] = y.astype(o_ref.dtype)


def _swish_2d(x2d, compute_dtype):
    """Run the Pallas kernel over a (rows, 128) slab."""
    rows, _ = x2d.shape
    itemsize = jnp.dtype(x2d.dtype).itemsize

    # Dtype-aware sublane multiple: 8 for f32, 16 for bf16, 32 for int8/fp8.
    sub_mult = max(SUBLANES, 32 // itemsize)

    tr_target = max(sub_mult,
                    (_TARGET_BLOCK_BYTES // (LANES * itemsize)) // sub_mult * sub_mult)
    tr_floor = max(sub_mult,
                   (_MIN_BLOCK_BYTES // (LANES * itemsize)) // sub_mult * sub_mult)

    # Aim for >= 4 grid steps (v7x megacore + pipelining) while keeping blocks
    # between the ~1 MiB floor and the ~6 MiB target.  Ragged last block OK.
    tr = min(tr_target, max(tr_floor, _round_up(pl.cdiv(rows, 4), sub_mult)))
    tr = min(tr, _round_up(rows, sub_mult))

    grid = (pl.cdiv(rows, tr),)

    n = rows * LANES
    cost = pl.CostEstimate(
        flops=4 * n,
        transcendentals=n,
        bytes_accessed=2 * n * itemsize,
    )

    return pl.pallas_call(
        functools.partial(_swish_kernel, compute_dtype=compute_dtype),
        out_shape=jax.ShapeDtypeStruct((rows, LANES), x2d.dtype),
        grid_spec=pltpu.PrefetchScalarGridSpec(
            num_scalar_prefetch=0,
            grid=grid,
            in_specs=[pl.BlockSpec((tr, LANES), lambda i: (i, 0))],
            out_specs=pl.BlockSpec((tr, LANES), lambda i: (i, 0)),
        ),
        compiler_params=pltpu.CompilerParams(
            dimension_semantics=("parallel",),
            vmem_limit_bytes=_VMEM_LIMIT_BYTES,
        ),
        cost_estimate=cost,
    )(x2d)


def swish(x: jax.Array) -> jax.Array:
    """Elementwise Swish. Any shape/dtype; matches PyTorch x*sigmoid(x)."""
    orig_shape = x.shape
    orig_dtype = x.dtype
    n = x.size
    if n == 0:
        return x

    itemsize = jnp.dtype(orig_dtype).itemsize

    # Tiny tensors: pallas_call launch/pipeline overhead exceeds kernel time.
    if n * itemsize < _BYPASS_BYTES:
        return _swish_jnp(x)

    # bf16 VPU/EUP exist on v6e/v7x; keep f32 intermediates on v5e / f32 input.
    if orig_dtype == jnp.bfloat16 and _chip_generation() >= 6:
        compute_dtype = jnp.bfloat16
    else:
        compute_dtype = jnp.float32

    xf = jnp.ravel(x)
    rem = n % LANES
    n_main = n - rem

    main2d = xf[:n_main].reshape(n_main // LANES, LANES)
    out_main = _swish_2d(main2d, compute_dtype)

    if rem == 0:
        # Fast path: zero-copy reshape in / reshape out.
        return out_main.reshape(orig_shape)

    # Unaligned tail (< 128 elems): plain jnp, stitch only the tail back.
    out_tail = _swish_jnp(xf[n_main:])
    return jnp.concatenate([out_main.reshape(-1), out_tail]).reshape(orig_shape)


if __name__ == "__main__":
    key = jax.random.PRNGKey(0)
    k1, k2, k3, k4, k5 = jax.random.split(key, 5)

    # 1) Small NCHW input like the PyTorch module sees (tiny-input XLA bypass).
    x1 = jax.random.normal(k1, (2, 4, 16, 16), dtype=jnp.float32)
    y1 = jax.block_until_ready(swish(x1))
    assert y1.shape == x1.shape and y1.dtype == x1.dtype
    assert jnp.allclose(y1, x1 * jax.nn.sigmoid(x1), atol=1e-5, rtol=1e-5)

    # 2) Larger aligned f32 tensor -> Pallas kernel, multi-step grid.
    x2 = jax.random.normal(k2, (8, 64, 32, 32), dtype=jnp.float32)
    y2 = jax.block_until_ready(swish(x2))
    assert y2.shape == x2.shape and y2.dtype == x2.dtype
    assert jnp.allclose(y2, x2 * jax.nn.sigmoid(x2), atol=1e-5, rtol=1e-5)

    # 3) bf16 tensor -> Pallas kernel (native bf16 compute on v6e/v7x).
    x3 = jax.random.normal(k3, (8, 64, 32, 32), dtype=jnp.float32).astype(jnp.bfloat16)
    y3 = jax.block_until_ready(swish(x3))
    x3f = x3.astype(jnp.float32)
    assert y3.shape == x3.shape and y3.dtype == x3.dtype
    assert jnp.allclose(y3.astype(jnp.float32), x3f * jax.nn.sigmoid(x3f),
                        atol=5e-2, rtol=5e-2)

    # 4) Large lane-unaligned tensor -> kernel on aligned prefix + jnp tail.
    x4 = jax.random.normal(k4, (517, 259), dtype=jnp.float32)
    y4 = jax.block_until_ready(swish(x4))
    assert y4.shape == x4.shape and y4.dtype == x4.dtype
    assert jnp.allclose(y4, x4 * jax.nn.sigmoid(x4), atol=1e-5, rtol=1e-5)

    # 5) Small awkward shape (bypass path).
    x5 = jax.random.normal(k5, (3, 5, 7), dtype=jnp.float32)
    y5 = jax.block_until_ready(swish(x5))
    assert y5.shape == x5.shape and y5.dtype == x5.dtype
    assert jnp.allclose(y5, x5 * jax.nn.sigmoid(x5), atol=1e-5, rtol=1e-5)

    print("KERNEL_OK")
</pallas_src>

<mosaic_0001>
module attributes {stable_mosaic.version = 11 : i64} {
  func.func @_swish_kernel(%arg0: i32, %arg1: memref<2048x128xf32, #tpu.memory_space<vmem>>, %arg2: memref<2048x128xf32, #tpu.memory_space<vmem>>) attributes {dimension_semantics = [#tpu.dimension_semantics<parallel>], iteration_bounds = array<i64: 2>, scalar_prefetch = 0 : i64, scratch_operands = 0 : i64, tpu.core_type = #tpu.core_type<tc>, window_params = [{transform_indices = @transform_0, window_bounds = array<i64: 2048, 128>}, {transform_indices = @transform_1, window_bounds = array<i64: 2048, 128>}]} {
    %c0 = arith.constant 0 : index
    %c0_0 = arith.constant 0 : index
    %0 = vector.load %arg1[%c0, %c0_0] : memref<2048x128xf32, #tpu.memory_space<vmem>>, vector<2048x128xf32>
    %cst = arith.constant 5.000000e-01 : f32
    %1 = vector.broadcast %cst : f32 to vector<2048x128xf32>
    %2 = arith.mulf %1, %0 : vector<2048x128xf32>
    %cst_1 = arith.constant 5.000000e-01 : f32
    %3 = vector.broadcast %cst_1 : f32 to vector<2048x128xf32>
    %4 = arith.mulf %3, %0 : vector<2048x128xf32>
    %5 = math.tanh %4 : vector<2048x128xf32>
    %cst_2 = arith.constant 1.000000e+00 : f32
    %6 = vector.broadcast %cst_2 : f32 to vector<2048x128xf32>
    %7 = arith.addf %5, %6 : vector<2048x128xf32>
    %8 = arith.mulf %2, %7 : vector<2048x128xf32>
    %c0_3 = arith.constant 0 : index
    %c0_4 = arith.constant 0 : index
    %9 = vector.load %arg2[%c0_3, %c0_4] : memref<2048x128xf32, #tpu.memory_space<vmem>>, vector<2048x128xf32>
    tpu.vector_store %arg2[%c0_3, %c0_4], %8 {strides = array<i32>} : memref<2048x128xf32, #tpu.memory_space<vmem>>, vector<2048x128xf32>,
    return
  }
  func.func @transform_0(%arg0: i32) -> (i32, i32) {
    %c0_i32 = arith.constant 0 : i32
    %c0_i32_0 = arith.constant 0 : i32
    return %arg0, %c0_i32 : i32, i32
  }
  func.func @transform_1(%arg0: i32) -> (i32, i32) {
    %c0_i32 = arith.constant 0 : i32
    %c0_i32_0 = arith.constant 0 : i32
    return %arg0, %c0_i32 : i32, i32
  }
}

</mosaic_0001>

<bundles_post_ra>
// kernel: tpu_custom_call.1
= control target key start
LH: loop header
LB: loop body
LE: loop exit
PB: predicated region body
PF: predicated region fallthrough
CT: control target
= control target key end

     0   :  { %6 = vsyncpa [#allocation3], 0  ;;  %s4151_s0 = inlined_call_operand.hbm [shape: f32[4096,128], index: 0, kind: input, shape index: {}]   ;;  %s4152_s1 = inlined_call_operand.hbm [shape: f32[4096,128], index: 1, kind: output, shape index: {}]  }
   0x1   :  { %8 = vsyncpa [#allocation3 + $0x1], 0 }
   0x2   :  { %9 = vsyncpa [#allocation4], 0 }
   0x3   :  { %11 = vsyncpa [#allocation4 + $0x1], 0  ;;  %s2452_s6 = smov 0   ;;  %s2454_s7 = smov 0  }
   0x4   :  { %s2456_s8 = smov 0   ;;  %s2458_s9 = smov 0  }
   0x5 LB: > { %s2473_s10 = sadd.s32 4294967295, %s2434_s9   ;;  %s1760_s11 = sadd.s32 4294967294, %s2434_s9   ;;  %s2434_s9 = sphi %s2458_s9, %s4165_s9   ;;  %s2430_s8 = sphi %s2456_s8, %s4164_s8   ;;  %s2426_s7 = sphi %s2454_s7, %s4163_s7   ;;  %s2422_s6 = sphi %s2452_s6, %s4162_s6  }
   0x6   : > { %s2477_s12 = sadd.s32 1, %s2434_s9   ;;  %s24_s13 = sadd.s32 1, %s2430_s8 }
   0x7   : > { %s21_s14 = ssub.s32 %s2434_s9, %s2477_s12  ;;  %p31_p0 = scmp.ne.s32.totalorder %s2430_s8, %s2426_s7 }
   0x8   : > { %p22_p1 = scmp.eq.s32.totalorder %s21_s14, 0  ;;  %p32_p2 = scmp.eq.s32.totalorder %s2434_s9, 0 }
   0x9   : > { %p37_p3 = scmp.ne.s32.totalorder %s2426_s7, %s2422_s6  ;;  %p38_p4 = scmp.eq.s32.totalorder %s2473_s10, 0 }
   0xa   : > { %s2489_s15 = scalar_select %p22_p1, %s2430_s8, %s24_s13  }
   0xb   : > { %p2491_p5 = por %p32_p2, %p31_p0  ;;  %p2495_p6 = por %p38_p4, %p37_p3 }
   0xc   : > { %p61_p7 = scmp.eq.s32.totalorder %s2473_s10, 1  ;;  %p67_p8 = scmp.eq.s32.totalorder %s1760_s11, 1 }
   0xd   : > { %p1788_p10 = scmp.lt.s32.totalorder %s2434_s9, 2  ;;  %s87_s20 = sand.u32 1, %s2430_s8  }
   0xe   : > { %p2502_p11 = por %p61_p7, %p31_p0  ;;  %p2506_p12 = por %p67_p8, %p37_p3 }
   0xf   : > { %s1774_s21 = sshll.u32 %s2434_s9, 15  ;;  %s1763_s22 = sshll.u32 %s87_s20, 11 }
  0x10   : > { %s4156_s18 = scalar_select %p2502_p11, 1, 0 }
  0x11   : > { %s4157_s19 = scalar_select %p2506_p12, 1, 0 }
  0x12   : > { %s2515_s25 = scalar_lea.hbm %s4151_s0, %s1774_s21  ;;  %s91_s26 = scalar_lea.vmem [#allocation2], %s1763_s22 }
  0x13   : > { %s98_s27 = sshll.u32 %s91_s26, 4  ;;  %p2519_p13 = pnand %p1788_p10, %p2491_p5  ;;  %s2523_s27 = int_to_ptr.vmem [resolvable:$true] %s98_s27 }
  0x14   : > { %s2525_s29 = scalar_lea.sflag [#allocation3], %s87_s20  ;;  %s2338_s30 = scalar_lea.hbm %s2515_s25, 32768 }
  0x15   : > { %p2339_p0 = scmp.ne.s32.totalorder %s2515_s25, %s2338_s30  ;;  %p2340_p1 = pneg %p2519_p13 }
  0x16   : > { %s2343_s4 = scalar_lea.hbm %s4151_s0, 65536  ;;  %p2344_p4 = scmp.lt.u32.totalorder %s2515_s25, %s4151_s0 }
  0x17   : > { %p2341_p2 = pnand %p2340_p1, %p2339_p0  ;;  %p2345_p5 = scmp.lt.u32.totalorder %s2343_s4, %s2338_s30 }
  0x18   : > { %p2347_p8 = scmp.lt.u32.totalorder %s2338_s30, %s2515_s25 }
  0x19   : > { %p2342_p3 = pneg %p2341_p2  ;;  %p2346_p7 = por %p2345_p5, %p2344_p4 }
  0x1b   : > { %p2348_p10 = por %p2347_p8, %p2346_p7 }
  0x1d   : > { %p2349_p9 = pnand %p2348_p10, %p2342_p3 }
  0x1f   : > { %2352 = shalt.err (!%p2349_p9)
}
  0x20   : > { %s2353_s13 = scalar_lea.vmem %s2523_s27, 32768  ;;  %s2436_s14 = smov [#allocation2]  }
  0x21   : > { %p2354_p0 = scmp.ne.s32.totalorder %s2523_s27, %s2353_s13  ;;  %s2358_s16 = sshll.u32 %s2436_s14, 4  ;;  %s2359_s16 = int_to_ptr.vmem [resolvable:$false] %s2358_s16 }
  0x22   : > { %s2360_s20 = scalar_lea.vmem %s2359_s16, 65536  ;;  %p2361_p11 = scmp.lt.s32.totalorder %s2523_s27, %s2359_s16 }
  0x23   : > { %p2356_p2 = pnand %p2354_p0, %p2340_p1  ;;  %p2362_p4 = scmp.lt.s32.totalorder %s2360_s20, %s2353_s13 }
  0x25   : > { %p2357_p12 = pneg %p2356_p2  ;;  %p2363_p5 = por %p2362_p4, %p2361_p11 }
  0x27   : > { %p2364_p7 = pnand %p2363_p5, %p2357_p12 }
  0x29   : > { %2367 = shalt.err (!%p2364_p7)
}
  0x2a   : > { %s2437_s21 = smov 128   ;;  %s2438_s22 = smov 8  }
  0x2b   : > { %1783 = dma.hbm_to_vmem [thread:$0]  (!%p2519_p13), %s2515_s25, 32768, %s2523_s27, %s2525_s29, %s2437_s21, %s2437_s21, %s2438_s22  }
  0x2c   : > { %p1766_p9 = scmp.ge.s32.totalorder %s2434_s9, 1  ;;  %p106_p1 = scmp.lt.s32.totalorder %s2434_s9, 3 }
  0x2e   : > { %p107_p3 = pnand %p1766_p9, %p106_p1 }
  0x2f   : > { %s2556_s23 = sand.u32 (!%p107_p3), 1, %s2426_s7  }
  0x30   : > { %110 = sbr.rel (%p107_p3) target bundleno = 344 (0x158), region = 24  ;;  %s1767_s24 = sshll.u32 (!%p107_p3), %s2556_s23, 11 }
  0x31   : > { %s113_s26 = scalar_lea.sflag (!%p107_p3), [#allocation3], %s2556_s23  ;;  %s2562_s30 = scalar_lea.vmem (!%p107_p3), [#allocation2], %s1767_s24 }
  0x37   : > { %2413 = dma.done.wait (%p2495_p6), %s113_s26, 32768  }
  0x38   : > { %2415 = vsyncadd (%p2495_p6), %s113_s26, 4294934528  ;;  %v137_v0 = vld [vmem:[%s2562_s30] sm:$0xff]  ;;  %v138_v1 = vld [vmem:[%s2562_s30 + $0x8] sm:$0xff]  ;;  %s2639_s17 = scalar_lea.vmem [#allocation5], %s1767_s24  ;;  %s1775_s25 = sshll.u32 %s2473_s10, 15 }
  0x39   : > { %v139_v2 = vld [vmem:[%s2562_s30 + $0x10] sm:$0xff]  ;;  %v393_v3 = vmul.f32 0.5, %v137_v0  ;;  %v394_v4 = vmul.f32 0.5, %v138_v1  ;;  %v140_v6 = vld [vmem:[%s2562_s30 + $0x18] sm:$0xff]  ;;  %v141_v7 = vld [vmem:[%s2562_s30 + $0x20] sm:$0xff]  ;;  %s1687_s27 = sshll.u32 %s2639_s17, 4  ;;  %s4101_s10 = scalar_lea.hbm %s4152_s1, %s1775_s25  ;;  %s4103_s27 = int_to_ptr.vmem [resolvable:$true] %s1687_s27 }
  0x3a   : > { %v2571_v5 = vmul.f32 0.5, %v139_v2  ;;  %v142_v8 = vld [vmem:[%s2562_s30 + $0x28] sm:$0xff]  ;;  %v2576_v9 = vmul.f32 0.5, %v140_v6  ;;  %v143_v10 = vld [vmem:[%s2562_s30 + $0x30] sm:$0xff]  ;;  %v2579_v11 = vmul.f32 0.5, %v141_v7  ;;  %v144_v12 = vld [vmem:[%s2562_s30 + $0x38] sm:$0xff] }
  0x3b   : > { %1826 = vtanh.f32 %v393_v3  ;;  %v2582_v13 = vmul.f32 0.5, %v142_v8  ;;  %v145_v14 = vld [vmem:[%s2562_s30 + $0x40] sm:$0xff]  ;;  %v2586_v15 = vmul.f32 0.5, %v143_v10  ;;  %v146_v16 = vld [vmem:[%s2562_s30 + $0x48] sm:$0xff]  ;;  %v2590_v17 = vmul.f32 0.5, %v144_v12  ;;  %v147_v18 = vld [vmem:[%s2562_s30 + $0x50] sm:$0xff] }
  0x3c   : > { %1828 = vtanh.f32 %v394_v4  ;;  %v2594_v19 = vmul.f32 0.5, %v145_v14  ;;  %v148_v20 = vld [vmem:[%s2562_s30 + $0x58] sm:$0xff]  ;;  %v2598_v21 = vmul.f32 0.5, %v146_v16  ;;  %v149_v22 = vld [vmem:[%s2562_s30 + $0x60] sm:$0xff]  ;;  %v2602_v23 = vmul.f32 0.5, %v147_v18  ;;  %v150_v24 = vld [vmem:[%s2562_s30 + $0x68] sm:$0xff] }
  0x3d   : > { %1830 = vtanh.f32 %v2571_v5  ;;  %v2606_v25 = vmul.f32 0.5, %v148_v20  ;;  %v151_v26 = vld [vmem:[%s2562_s30 + $0x70] sm:$0xff]  ;;  %v2610_v27 = vmul.f32 0.5, %v149_v22  ;;  %v152_v28 = vld [vmem:[%s2562_s30 + $0x78] sm:$0xff]  ;;  %v2614_v29 = vmul.f32 0.5, %v150_v24  ;;  %v153_v30 = vld [vmem:[%s2562_s30 + $0x80] sm:$0xff] }
  0x3e   : > { %1832 = vtanh.f32 %v2576_v9  ;;  %v2618_v32 = vmul.f32 0.5, %v151_v26  ;;  %v154_v33 = vld [vmem:[%s2562_s30 + $0x88] sm:$0xff]  ;;  %v2622_v36 = vmul.f32 0.5, %v152_v28  ;;  %v155_v37 = vld [vmem:[%s2562_s30 + $0x90] sm:$0xff]  ;;  %v2626_v40 = vmul.f32 0.5, %v153_v30  ;;  %v156_v41 = vld [vmem:[%s2562_s30 + $0x98] sm:$0xff] }
  0x3f   : > { %1834 = vtanh.f32 %v2579_v11  ;;  %v2630_v45 = vmul.f32 0.5, %v154_v33  ;;  %v157_v46 = vld [vmem:[%s2562_s30 + $0xa0] sm:$0xff]  ;;  %v2634_v50 = vmul.f32 0.5, %v155_v37  ;;  %v158_v51 = vld [vmem:[%s2562_s30 + $0xa8] sm:$0xff]  ;;  %v2644_v55 = vmul.f32 0.5, %v156_v41  ;;  %v159_v56 = vld [vmem:[%s2562_s30 + $0xb0] sm:$0xff] }
  0x40   : > { %1836 = vtanh.f32 %v2582_v13  ;;  %v2650_v60 = vmul.f32 0.5, %v157_v46  ;;  %v160_v61 = vld [vmem:[%s2562_s30 + $0xb8] sm:$0xff]  ;;  %v2656_v1 = vmul.f32 0.5, %v158_v51  ;;  %v161_v2 = vld [vmem:[%s2562_s30 + $0xc0] sm:$0xff]  ;;  %v2662_v6 = vmul.f32 0.5, %v159_v56  ;;  %v162_v7 = vld [vmem:[%s2562_s30 + $0xc8] sm:$0xff] }
  0x41   : > { %1838 = vtanh.f32 %v2586_v15  ;;  %v163_v12 = vld [vmem:[%s2562_s30 + $0xd0] sm:$0xff]  ;;  %v2674_v18 = vmul.f32 0.5, %v161_v2  ;;  %v164_v20 = vld [vmem:[%s2562_s30 + $0xd8] sm:$0xff]  ;;  %v2680_v26 = vmul.f32 0.5, %v162_v7  ;;  %v165_v28 = vld [vmem:[%s2562_s30 + $0xe0] sm:$0xff]  ;;  %s1674_s2 = scalar_lea.sflag [#allocation4], %s2556_s23 }
  0x42   : > { %1840 = vtanh.f32 %v2590_v17  ;;  %v2686_v33 = vmul.f32 0.5, %v163_v12  ;;  %s2368_s3 = scalar_lea.vmem %s4103_s27, 32768  ;;  %p4159_p11 = scmp.ne.s32.totalorder %s4156_s18, 0 }
  0x43   : > { %1842 = vtanh.f32 %v2594_v19  ;;  %p2369_p6 = scmp.ne.s32.totalorder %s4103_s27, %s2368_s3  ;;  %s2439_s4 = smov [#allocation5]  }
  0x44   : > { %1844 = vtanh.f32 %v2598_v21  ;;  %s2372_s5 = sshll.u32 %s2439_s4, 4  ;;  %s2373_s5 = int_to_ptr.vmem [resolvable:$false] %s2372_s5 }
  0x45   : > { %v1827_v31 = vpop.eup %1826  ;;  %1846 = vtanh.f32 %v2602_v23  ;;  %p2370_p12 = pnand %p2369_p6, %p4159_p11  ;;  %s2374_s11 = scalar_lea.vmem %s2373_s5, 65536 }
  0x46   : > { %v1829_v34 = vpop.eup %1828  ;;  %v905_v35 = vadd.f32 1.0, %v1827_v31  ;;  %1848 = vtanh.f32 %v2606_v25  ;;  %p2375_p8 = scmp.lt.s32.totalorder %s4103_s27, %s2373_s5  ;;  %p2376_p10 = scmp.lt.s32.totalorder %s2374_s11, %s2368_s3 }
  0x47   : > { %v1831_v38 = vpop.eup %1830  ;;  %v906_v39 = vadd.f32 1.0, %v1829_v34  ;;  %1850 = vtanh.f32 %v2610_v27  ;;  %v166_v34 = vld [vmem:[%s2562_s30 + $0xe8] sm:$0xff]  ;;  %p2371_p13 = pneg %p2370_p12 }
  0x48   : > { %v1833_v42 = vpop.eup %1832  ;;  %v1161_v43 = vmul.f32 %v905_v35, %v393_v3  ;;  %v907_v44 = vadd.f32 1.0, %v1831_v38  ;;  %1852 = vtanh.f32 %v2614_v29  ;;  %v2692_v38 = vmul.f32 0.5, %v164_v20  ;;  %p2377_p0 = por %p2376_p10, %p2375_p8 }
  0x49   : > { %v1835_v47 = vpop.eup %1834  ;;  %v1162_v48 = vmul.f32 %v906_v39, %v394_v4  ;;  %v908_v49 = vadd.f32 1.0, %v1833_v42  ;;  %1854 = vtanh.f32 %v2618_v32  ;;  %v167_v39 = vld [vmem:[%s2562_s30 + $0xf0] sm:$0xff] }
  0x4a   : > { %v1837_v52 = vpop.eup %1836  ;;  %1417 = vst [vmem:[%s2639_s17] sm:$0xff] %v1161_v43  ;;  %v1163_v53 = vmul.f32 %v907_v44, %v2571_v5  ;;  %v909_v54 = vadd.f32 1.0, %v1835_v47  ;;  %1856 = vtanh.f32 %v2622_v36  ;;  %v2698_v43 = vmul.f32 0.5, %v165_v28  ;;  %v168_v44 = vld [vmem:[%s2562_s30 + $0xf8] sm:$0xff]  ;;  %p2378_p2 = pnand %p2377_p0, %p2371_p13 }
  0x4b   : > { %v1839_v57 = vpop.eup %1838  ;;  %1418 = vst [vmem:[%s2639_s17 + $0x8] sm:$0xff] %v1162_v48  ;;  %v1164_v58 = vmul.f32 %v908_v49, %v2576_v9  ;;  %v910_v59 = vadd.f32 1.0, %v1837_v52  ;;  %1858 = vtanh.f32 %v2626_v40  ;;  %v2704_v48 = vmul.f32 0.5, %v166_v34  ;;  %v169_v49 = vld [vmem:[%s2562_s30 + $0x100] sm:$0xff] }
  0x4c   : > { %v1841_v62 = vpop.eup %1840  ;;  %1419 = vst [vmem:[%s2639_s17 + $0x10] sm:$0xff] %v1163_v53  ;;  %v1165_v63 = vmul.f32 %v909_v54, %v2579_v11  ;;  %v911_v0 = vadd.f32 1.0, %v1839_v57  ;;  %1860 = vtanh.f32 %v2630_v45  ;;  %v2668_v11 = vmul.f32 0.5, %v160_v61  ;;  %v170_v54 = vld [vmem:[%s2562_s30 + $0x108] sm:$0xff] }
  0x4d   : > { %v1843_v3 = vpop.eup %1842  ;;  %1420 = vst [vmem:[%s2639_s17 + $0x18] sm:$0xff] %v1164_v58  ;;  %v1166_v4 = vmul.f32 %v910_v59, %v2582_v13  ;;  %v912_v5 = vadd.f32 1.0, %v1841_v62  ;;  %1862 = vtanh.f32 %v2634_v50  ;;  %v2710_v53 = vmul.f32 0.5, %v167_v39  ;;  %v171_v59 = vld [vmem:[%s2562_s30 + $0x110] sm:$0xff] }
  0x4e   : > { %v1845_v8 = vpop.eup %1844  ;;  %1421 = vst [vmem:[%s2639_s17 + $0x20] sm:$0xff] %v1165_v63  ;;  %v1167_v9 = vmul.f32 %v911_v0, %v2586_v15  ;;  %v913_v10 = vadd.f32 1.0, %v1843_v3  ;;  %1864 = vtanh.f32 %v2644_v55  ;;  %v2716_v58 = vmul.f32 0.5, %v168_v44  ;;  %v172_v0 = vld [vmem:[%s2562_s30 + $0x118] sm:$0xff] }
  0x4f   : > { %v1847_v13 = vpop.eup %1846  ;;  %1422 = vst [vmem:[%s2639_s17 + $0x28] sm:$0xff] %v1166_v4  ;;  %v1168_v14 = vmul.f32 %v912_v5, %v2590_v17  ;;  %v914_v16 = vadd.f32 1.0, %v1845_v8  ;;  %1866 = vtanh.f32 %v2650_v60  ;;  %v2722_v63 = vmul.f32 0.5, %v169_v49  ;;  %v173_v5 = vld [vmem:[%s2562_s30 + $0x120] sm:$0xff] }
  0x50   : > { %v1849_v15 = vpop.eup %1848  ;;  %1423 = vst [vmem:[%s2639_s17 + $0x30] sm:$0xff] %v1167_v9  ;;  %v1169_v22 = vmul.f32 %v913_v10, %v2594_v19  ;;  %v915_v24 = vadd.f32 1.0, %v1847_v13  ;;  %1868 = vtanh.f32 %v2656_v1  ;;  %v2728_v4 = vmul.f32 0.5, %v170_v54  ;;  %v174_v10 = vld [vmem:[%s2562_s30 + $0x128] sm:$0xff] }
  0x51   : > { %v1851_v17 = vpop.eup %1850  ;;  %1424 = vst [vmem:[%s2639_s17 + $0x38] sm:$0xff] %v1168_v14  ;;  %v1170_v30 = vmul.f32 %v914_v16, %v2598_v21  ;;  %v916_v31 = vadd.f32 1.0, %v1849_v15  ;;  %1870 = vtanh.f32 %v2662_v6  ;;  %v2734_v9 = vmul.f32 0.5, %v171_v59  ;;  %v175_v16 = vld [vmem:[%s2562_s30 + $0x130] sm:$0xff] }
  0x52   : > { %v1853_v19 = vpop.eup %1852  ;;  %1425 = vst [vmem:[%s2639_s17 + $0x40] sm:$0xff] %v1169_v22  ;;  %v1171_v35 = vmul.f32 %v915_v24, %v2602_v23  ;;  %v917_v37 = vadd.f32 1.0, %v1851_v17  ;;  %1872 = vtanh.f32 %v2668_v11  ;;  %v2740_v14 = vmul.f32 0.5, %v172_v0  ;;  %v176_v24 = vld [vmem:[%s2562_s30 + $0x138] sm:$0xff] }
  0x53   : > { %v1855_v21 = vpop.eup %1854  ;;  %1426 = vst [vmem:[%s2639_s17 + $0x48] sm:$0xff] %v1170_v30  ;;  %v1172_v41 = vmul.f32 %v916_v31, %v2606_v25  ;;  %v918_v42 = vadd.f32 1.0, %v1853_v19  ;;  %1874 = vtanh.f32 %v2674_v18  ;;  %v2746_v22 = vmul.f32 0.5, %v173_v5  ;;  %v177_v31 = vld [vmem:[%s2562_s30 + $0x140] sm:$0xff] }
  0x54   : > { %v1857_v23 = vpop.eup %1856  ;;  %1427 = vst [vmem:[%s2639_s17 + $0x50] sm:$0xff] %v1171_v35  ;;  %v1173_v46 = vmul.f32 %v917_v37, %v2610_v27  ;;  %v919_v47 = vadd.f32 1.0, %v1855_v21  ;;  %1876 = vtanh.f32 %v2680_v26  ;;  %v2752_v30 = vmul.f32 0.5, %v174_v10  ;;  %v178_v37 = vld [vmem:[%s2562_s30 + $0x148] sm:$0xff] }
  0x55   : > { %v1859_v25 = vpop.eup %1858  ;;  %1428 = vst [vmem:[%s2639_s17 + $0x58] sm:$0xff] %v1172_v41  ;;  %v1174_v51 = vmul.f32 %v918_v42, %v2614_v29  ;;  %v920_v52 = vadd.f32 1.0, %v1857_v23  ;;  %1878 = vtanh.f32 %v2686_v33  ;;  %v2758_v35 = vmul.f32 0.5, %v175_v16  ;;  %v179_v42 = vld [vmem:[%s2562_s30 + $0x150] sm:$0xff] }
  0x56   : > { %v1861_v27 = vpop.eup %1860  ;;  %1429 = vst [vmem:[%s2639_s17 + $0x60] sm:$0xff] %v1173_v46  ;;  %v1175_v56 = vmul.f32 %v919_v47, %v2618_v32  ;;  %v921_v57 = vadd.f32 1.0, %v1859_v25  ;;  %1880 = vtanh.f32 %v2692_v38  ;;  %v2764_v41 = vmul.f32 0.5, %v176_v24  ;;  %v180_v47 = vld [vmem:[%s2562_s30 + $0x158] sm:$0xff] }
  0x57   : > { %v1863_v29 = vpop.eup %1862  ;;  %1430 = vst [vmem:[%s2639_s17 + $0x68] sm:$0xff] %v1174_v51  ;;  %v1176_v61 = vmul.f32 %v920_v52, %v2622_v36  ;;  %v922_v62 = vadd.f32 1.0, %v1861_v27  ;;  %1882 = vtanh.f32 %v2698_v43  ;;  %v2770_v46 = vmul.f32 0.5, %v177_v31  ;;  %v181_v52 = vld [vmem:[%s2562_s30 + $0x160] sm:$0xff] }
  0x58   : > { %v1865_v32 = vpop.eup %1864  ;;  %1431 = vst [vmem:[%s2639_s17 + $0x70] sm:$0xff] %v1175_v56  ;;  %v1177_v2 = vmul.f32 %v921_v57, %v2626_v40  ;;  %v923_v3 = vadd.f32 1.0, %v1863_v29  ;;  %1884 = vtanh.f32 %v2704_v48  ;;  %v2776_v51 = vmul.f32 0.5, %v178_v37  ;;  %v182_v57 = vld [vmem:[%s2562_s30 + $0x168] sm:$0xff] }
  0x59   : > { %v1867_v36 = vpop.eup %1866  ;;  %1432 = vst [vmem:[%s2639_s17 + $0x78] sm:$0xff] %v1176_v61  ;;  %v1178_v7 = vmul.f32 %v922_v62, %v2630_v45  ;;  %v924_v8 = vadd.f32 1.0, %v1865_v32  ;;  %1886 = vtanh.f32 %v2710_v53  ;;  %v2782_v56 = vmul.f32 0.5, %v179_v42  ;;  %v183_v62 = vld [vmem:[%s2562_s30 + $0x170] sm:$0xff] }
  0x5a   : > { %v1869_v40 = vpop.eup %1868  ;;  %1433 = vst [vmem:[%s2639_s17 + $0x80] sm:$0xff] %v1177_v2  ;;  %v1179_v12 = vmul.f32 %v923_v3, %v2634_v50  ;;  %v925_v13 = vadd.f32 1.0, %v1867_v36  ;;  %1888 = vtanh.f32 %v2716_v58  ;;  %v2788_v61 = vmul.f32 0.5, %v180_v47  ;;  %v184_v3 = vld [vmem:[%s2562_s30 + $0x178] sm:$0xff] }
  0x5b   : > { %v1871_v45 = vpop.eup %1870  ;;  %1434 = vst [vmem:[%s2639_s17 + $0x88] sm:$0xff] %v1178_v7  ;;  %v1180_v20 = vmul.f32 %v924_v8, %v2644_v55  ;;  %v926_v15 = vadd.f32 1.0, %v1869_v40  ;;  %1890 = vtanh.f32 %v2722_v63  ;;  %v2794_v2 = vmul.f32 0.5, %v181_v52  ;;  %v185_v8 = vld [vmem:[%s2562_s30 + $0x180] sm:$0xff] }
  0x5c   : > { %v1873_v50 = vpop.eup %1872  ;;  %1435 = vst [vmem:[%s2639_s17 + $0x90] sm:$0xff] %v1179_v12  ;;  %v1181_v28 = vmul.f32 %v925_v13, %v2650_v60  ;;  %v927_v17 = vadd.f32 1.0, %v1871_v45  ;;  %1892 = vtanh.f32 %v2728_v4  ;;  %v2800_v7 = vmul.f32 0.5, %v182_v57  ;;  %v186_v13 = vld [vmem:[%s2562_s30 + $0x188] sm:$0xff] }
  0x5d   : > { %v1875_v55 = vpop.eup %1874  ;;  %1436 = vst [vmem:[%s2639_s17 + $0x98] sm:$0xff] %v1180_v20  ;;  %v1182_v34 = vmul.f32 %v926_v15, %v2656_v1  ;;  %v928_v19 = vadd.f32 1.0, %v1873_v50  ;;  %1894 = vtanh.f32 %v2734_v9  ;;  %v2806_v12 = vmul.f32 0.5, %v183_v62  ;;  %v187_v15 = vld [vmem:[%s2562_s30 + $0x190] sm:$0xff] }
  0x5e   : > { %v1877_v60 = vpop.eup %1876  ;;  %1437 = vst [vmem:[%s2639_s17 + $0xa0] sm:$0xff] %v1181_v28  ;;  %v1183_v39 = vmul.f32 %v927_v17, %v2662_v6  ;;  %v929_v21 = vadd.f32 1.0, %v1875_v55  ;;  %1896 = vtanh.f32 %v2740_v14  ;;  %v2812_v20 = vmul.f32 0.5, %v184_v3  ;;  %v188_v17 = vld [vmem:[%s2562_s30 + $0x198] sm:$0xff] }
  0x5f   : > { %v1879_v1 = vpop.eup %1878  ;;  %1438 = vst [vmem:[%s2639_s17 + $0xa8] sm:$0xff] %v1182_v34  ;;  %v1184_v44 = vmul.f32 %v928_v19, %v2668_v11  ;;  %v930_v23 = vadd.f32 1.0, %v1877_v60  ;;  %1898 = vtanh.f32 %v2746_v22  ;;  %v2818_v28 = vmul.f32 0.5, %v185_v8  ;;  %v189_v19 = vld [vmem:[%s2562_s30 + $0x1a0] sm:$0xff] }
  0x60   : > { %v1881_v6 = vpop.eup %1880  ;;  %1439 = vst [vmem:[%s2639_s17 + $0xb0] sm:$0xff] %v1183_v39  ;;  %v1185_v49 = vmul.f32 %v929_v21, %v2674_v18  ;;  %v931_v25 = vadd.f32 1.0, %v1879_v1  ;;  %1900 = vtanh.f32 %v2752_v30  ;;  %v2824_v34 = vmul.f32 0.5, %v186_v13  ;;  %v190_v21 = vld [vmem:[%s2562_s30 + $0x1a8] sm:$0xff] }
  0x61   : > { %v1883_v11 = vpop.eup %1882  ;;  %1440 = vst [vmem:[%s2639_s17 + $0xb8] sm:$0xff] %v1184_v44  ;;  %v1186_v54 = vmul.f32 %v930_v23, %v2680_v26  ;;  %v932_v27 = vadd.f32 1.0, %v1881_v6  ;;  %1902 = vtanh.f32 %v2758_v35  ;;  %v2830_v39 = vmul.f32 0.5, %v187_v15  ;;  %v191_v23 = vld [vmem:[%s2562_s30 + $0x1b0] sm:$0xff] }
  0x62   : > { %v1885_v18 = vpop.eup %1884  ;;  %1441 = vst [vmem:[%s2639_s17 + $0xc0] sm:$0xff] %v1185_v49  ;;  %v1187_v59 = vmul.f32 %v931_v25, %v2686_v33  ;;  %v933_v29 = vadd.f32 1.0, %v1883_v11  ;;  %1904 = vtanh.f32 %v2764_v41  ;;  %v2836_v44 = vmul.f32 0.5, %v188_v17  ;;  %v192_v25 = vld [vmem:[%s2562_s30 + $0x1b8] sm:$0xff] }
  0x63   : > { %v1887_v26 = vpop.eup %1886  ;;  %1442 = vst [vmem:[%s2639_s17 + $0xc8] sm:$0xff] %v1186_v54  ;;  %v1188_v0 = vmul.f32 %v932_v27, %v2692_v38  ;;  %v934_v32 = vadd.f32 1.0, %v1885_v18  ;;  %1906 = vtanh.f32 %v2770_v46  ;;  %v2842_v49 = vmul.f32 0.5, %v189_v19  ;;  %v193_v27 = vld [vmem:[%s2562_s30 + $0x1c0] sm:$0xff] }
  0x64   : > { %v1889_v33 = vpop.eup %1888  ;;  %1443 = vst [vmem:[%s2639_s17 + $0xd0] sm:$0xff] %v1187_v59  ;;  %v1189_v5 = vmul.f32 %v933_v29, %v2698_v43  ;;  %v935_v36 = vadd.f32 1.0, %v1887_v26  ;;  %1908 = vtanh.f32 %v2776_v51  ;;  %v2848_v54 = vmul.f32 0.5, %v190_v21  ;;  %v194_v29 = vld [vmem:[%s2562_s30 + $0x1c8] sm:$0xff] }
  0x65   : > { %v1891_v38 = vpop.eup %1890  ;;  %1444 = vst [vmem:[%s2639_s17 + $0xd8] sm:$0xff] %v1188_v0  ;;  %v1190_v10 = vmul.f32 %v934_v32, %v2704_v48  ;;  %v936_v40 = vadd.f32 1.0, %v1889_v33  ;;  %1910 = vtanh.f32 %v2782_v56  ;;  %v2854_v59 = vmul.f32 0.5, %v191_v23  ;;  %v195_v32 = vld [vmem:[%s2562_s30 + $0x1d0] sm:$0xff] }
  0x66   : > { %v1893_v43 = vpop.eup %1892  ;;  %1445 = vst [vmem:[%s2639_s17 + $0xe0] sm:$0xff] %v1189_v5  ;;  %v1191_v16 = vmul.f32 %v935_v36, %v2710_v53  ;;  %v937_v45 = vadd.f32 1.0, %v1891_v38  ;;  %1912 = vtanh.f32 %v2788_v61  ;;  %v2860_v0 = vmul.f32 0.5, %v192_v25  ;;  %v196_v36 = vld [vmem:[%s2562_s30 + $0x1d8] sm:$0xff] }
  0x67   : > { %v1895_v48 = vpop.eup %1894  ;;  %1446 = vst [vmem:[%s2639_s17 + $0xe8] sm:$0xff] %v1190_v10  ;;  %v1192_v24 = vmul.f32 %v936_v40, %v2716_v58  ;;  %v938_v50 = vadd.f32 1.0, %v1893_v43  ;;  %1914 = vtanh.f32 %v2794_v2  ;;  %v2866_v5 = vmul.f32 0.5, %v193_v27  ;;  %v197_v40 = vld [vmem:[%s2562_s30 + $0x1e0] sm:$0xff] }
  0x68   : > { %v1897_v53 = vpop.eup %1896  ;;  %1447 = vst [vmem:[%s2639_s17 + $0xf0] sm:$0xff] %v1191_v16  ;;  %v1193_v31 = vmul.f32 %v937_v45, %v2722_v63  ;;  %v939_v55 = vadd.f32 1.0, %v1895_v48  ;;  %1916 = vtanh.f32 %v2800_v7  ;;  %v2872_v10 = vmul.f32 0.5, %v194_v29  ;;  %v198_v45 = vld [vmem:[%s2562_s30 + $0x1e8] sm:$0xff] }
  0x69   : > { %v1899_v58 = vpop.eup %1898  ;;  %1448 = vst [vmem:[%s2639_s17 + $0xf8] sm:$0xff] %v1192_v24  ;;  %v1194_v37 = vmul.f32 %v938_v50, %v2728_v4  ;;  %v940_v60 = vadd.f32 1.0, %v1897_v53  ;;  %1918 = vtanh.f32 %v2806_v12  ;;  %v2878_v16 = vmul.f32 0.5, %v195_v32  ;;  %v199_v50 = vld [vmem:[%s2562_s30 + $0x1f0] sm:$0xff] }
  0x6a   : > { %v1901_v63 = vpop.eup %1900  ;;  %1449 = vst [vmem:[%s2639_s17 + $0x100] sm:$0xff] %v1193_v31  ;;  %v1195_v42 = vmul.f32 %v939_v55, %v2734_v9  ;;  %v941_v1 = vadd.f32 1.0, %v1899_v58  ;;  %1920 = vtanh.f32 %v2812_v20  ;;  %v2884_v24 = vmul.f32 0.5, %v196_v36  ;;  %v200_v55 = vld [vmem:[%s2562_s30 + $0x1f8] sm:$0xff] }
  0x6b   : > { %v1903_v4 = vpop.eup %1902  ;;  %1450 = vst [vmem:[%s2639_s17 + $0x108] sm:$0xff] %v1194_v37  ;;  %v1196_v47 = vmul.f32 %v940_v60, %v2740_v14  ;;  %v942_v6 = vadd.f32 1.0, %v1901_v63  ;;  %1922 = vtanh.f32 %v2818_v28  ;;  %v2890_v31 = vmul.f32 0.5, %v197_v40  ;;  %v201_v60 = vld [vmem:[%s2562_s30 + $0x200] sm:$0xff] }
  0x6c   : > { %v1905_v9 = vpop.eup %1904  ;;  %1451 = vst [vmem:[%s2639_s17 + $0x110] sm:$0xff] %v1195_v42  ;;  %v1197_v52 = vmul.f32 %v941_v1, %v2746_v22  ;;  %v943_v11 = vadd.f32 1.0, %v1903_v4  ;;  %1924 = vtanh.f32 %v2824_v34  ;;  %v2896_v37 = vmul.f32 0.5, %v198_v45  ;;  %v202_v1 = vld [vmem:[%s2562_s30 + $0x208] sm:$0xff] }
  0x6d   : > { %v1907_v14 = vpop.eup %1906  ;;  %1452 = vst [vmem:[%s2639_s17 + $0x118] sm:$0xff] %v1196_v47  ;;  %v1198_v57 = vmul.f32 %v942_v6, %v2752_v30  ;;  %v944_v18 = vadd.f32 1.0, %v1905_v9  ;;  %1926 = vtanh.f32 %v2830_v39  ;;  %v2902_v42 = vmul.f32 0.5, %v199_v50  ;;  %v203_v6 = vld [vmem:[%s2562_s30 + $0x210] sm:$0xff] }
  0x6e   : > { %v1909_v22 = vpop.eup %1908  ;;  %1453 = vst [vmem:[%s2639_s17 + $0x120] sm:$0xff] %v1197_v52  ;;  %v1199_v62 = vmul.f32 %v943_v11, %v2758_v35  ;;  %v945_v26 = vadd.f32 1.0, %v1907_v14  ;;  %1928 = vtanh.f32 %v2836_v44  ;;  %v2908_v47 = vmul.f32 0.5, %v200_v55  ;;  %v204_v11 = vld [vmem:[%s2562_s30 + $0x218] sm:$0xff] }
  0x6f   : > { %v1911_v30 = vpop.eup %1910  ;;  %1454 = vst [vmem:[%s2639_s17 + $0x128] sm:$0xff] %v1198_v57  ;;  %v1200_v3 = vmul.f32 %v944_v18, %v2764_v41  ;;  %v946_v33 = vadd.f32 1.0, %v1909_v22  ;;  %1930 = vtanh.f32 %v2842_v49  ;;  %v2914_v52 = vmul.f32 0.5, %v201_v60  ;;  %v205_v18 = vld [vmem:[%s2562_s30 + $0x220] sm:$0xff] }
  0x70   : > { %v1913_v35 = vpop.eup %1912  ;;  %1455 = vst [vmem:[%s2639_s17 + $0x130] sm:$0xff] %v1199_v62  ;;  %v1201_v8 = vmul.f32 %v945_v26, %v2770_v46  ;;  %v947_v38 = vadd.f32 1.0, %v1911_v30  ;;  %1932 = vtanh.f32 %v2848_v54  ;;  %v2920_v57 = vmul.f32 0.5, %v202_v1  ;;  %v206_v26 = vld [vmem:[%s2562_s30 + $0x228] sm:$0xff] }
  0x71   : > { %v1915_v41 = vpop.eup %1914  ;;  %1456 = vst [vmem:[%s2639_s17 + $0x138] sm:$0xff] %v1200_v3  ;;  %v1202_v13 = vmul.f32 %v946_v33, %v2776_v51  ;;  %v948_v43 = vadd.f32 1.0, %v1913_v35  ;;  %1934 = vtanh.f32 %v2854_v59  ;;  %v2926_v62 = vmul.f32 0.5, %v203_v6  ;;  %v207_v33 = vld [vmem:[%s2562_s30 + $0x230] sm:$0xff] }
  0x72   : > { %v1917_v46 = vpop.eup %1916  ;;  %1457 = vst [vmem:[%s2639_s17 + $0x140] sm:$0xff] %v1201_v8  ;;  %v1203_v15 = vmul.f32 %v947_v38, %v2782_v56  ;;  %v949_v48 = vadd.f32 1.0, %v1915_v41  ;;  %1936 = vtanh.f32 %v2860_v0  ;;  %v2932_v3 = vmul.f32 0.5, %v204_v11  ;;  %v208_v38 = vld [vmem:[%s2562_s30 + $0x238] sm:$0xff] }
  0x73   : > { %v1919_v51 = vpop.eup %1918  ;;  %1458 = vst [vmem:[%s2639_s17 + $0x148] sm:$0xff] %v1202_v13  ;;  %v1204_v17 = vmul.f32 %v948_v43, %v2788_v61  ;;  %v950_v53 = vadd.f32 1.0, %v1917_v46  ;;  %1938 = vtanh.f32 %v2866_v5  ;;  %v2938_v8 = vmul.f32 0.5, %v205_v18  ;;  %v209_v43 = vld [vmem:[%s2562_s30 + $0x240] sm:$0xff] }
  0x74   : > { %v1921_v56 = vpop.eup %1920  ;;  %1459 = vst [vmem:[%s2639_s17 + $0x150] sm:$0xff] %v1203_v15  ;;  %v1205_v19 = vmul.f32 %v949_v48, %v2794_v2  ;;  %v951_v58 = vadd.f32 1.0, %v1919_v51  ;;  %1940 = vtanh.f32 %v2872_v10  ;;  %v2944_v13 = vmul.f32 0.5, %v206_v26  ;;  %v210_v48 = vld [vmem:[%s2562_s30 + $0x248] sm:$0xff] }
  0x75   : > { %v1923_v61 = vpop.eup %1922  ;;  %1460 = vst [vmem:[%s2639_s17 + $0x158] sm:$0xff] %v1204_v17  ;;  %v1206_v21 = vmul.f32 %v950_v53, %v2800_v7  ;;  %v952_v63 = vadd.f32 1.0, %v1921_v56  ;;  %1942 = vtanh.f32 %v2878_v16  ;;  %v2950_v15 = vmul.f32 0.5, %v207_v33  ;;  %v211_v53 = vld [vmem:[%s2562_s30 + $0x250] sm:$0xff] }
  0x76   : > { %v1925_v2 = vpop.eup %1924  ;;  %1461 = vst [vmem:[%s2639_s17 + $0x160] sm:$0xff] %v1205_v19  ;;  %v1207_v23 = vmul.f32 %v951_v58, %v2806_v12  ;;  %v953_v4 = vadd.f32 1.0, %v1923_v61  ;;  %1944 = vtanh.f32 %v2884_v24  ;;  %v2956_v17 = vmul.f32 0.5, %v208_v38  ;;  %v212_v58 = vld [vmem:[%s2562_s30 + $0x258] sm:$0xff] }
  0x77   : > { %v1927_v7 = vpop.eup %1926  ;;  %1462 = vst [vmem:[%s2639_s17 + $0x168] sm:$0xff] %v1206_v21  ;;  %v1208_v25 = vmul.f32 %v952_v63, %v2812_v20  ;;  %v954_v9 = vadd.f32 1.0, %v1925_v2  ;;  %1946 = vtanh.f32 %v2890_v31  ;;  %v2962_v19 = vmul.f32 0.5, %v209_v43  ;;  %v213_v63 = vld [vmem:[%s2562_s30 + $0x260] sm:$0xff] }
  0x78   : > { %v1929_v12 = vpop.eup %1928  ;;  %1463 = vst [vmem:[%s2639_s17 + $0x170] sm:$0xff] %v1207_v23  ;;  %v1209_v27 = vmul.f32 %v953_v4, %v2818_v28  ;;  %v955_v14 = vadd.f32 1.0, %v1927_v7  ;;  %1948 = vtanh.f32 %v2896_v37  ;;  %v2968_v21 = vmul.f32 0.5, %v210_v48  ;;  %v214_v4 = vld [vmem:[%s2562_s30 + $0x268] sm:$0xff] }
  0x79   : > { %v1931_v20 = vpop.eup %1930  ;;  %1464 = vst [vmem:[%s2639_s17 + $0x178] sm:$0xff] %v1208_v25  ;;  %v1210_v29 = vmul.f32 %v954_v9, %v2824_v34  ;;  %v956_v22 = vadd.f32 1.0, %v1929_v12  ;;  %1950 = vtanh.f32 %v2902_v42  ;;  %v2974_v23 = vmul.f32 0.5, %v211_v53  ;;  %v215_v9 = vld [vmem:[%s2562_s30 + $0x270] sm:$0xff] }
  0x7a   : > { %v1933_v28 = vpop.eup %1932  ;;  %1465 = vst [vmem:[%s2639_s17 + $0x180] sm:$0xff] %v1209_v27  ;;  %v1211_v32 = vmul.f32 %v955_v14, %v2830_v39  ;;  %v957_v30 = vadd.f32 1.0, %v1931_v20  ;;  %1952 = vtanh.f32 %v2908_v47  ;;  %v2980_v25 = vmul.f32 0.5, %v212_v58  ;;  %v216_v14 = vld [vmem:[%s2562_s30 + $0x278] sm:$0xff] }
  0x7b   : > { %v1935_v34 = vpop.eup %1934  ;;  %1466 = vst [vmem:[%s2639_s17 + $0x188] sm:$0xff] %v1210_v29  ;;  %v1212_v36 = vmul.f32 %v956_v22, %v2836_v44  ;;  %v958_v35 = vadd.f32 1.0, %v1933_v28  ;;  %1954 = vtanh.f32 %v2914_v52  ;;  %v2986_v27 = vmul.f32 0.5, %v213_v63  ;;  %v217_v22 = vld [vmem:[%s2562_s30 + $0x280] sm:$0xff] }
  0x7c   : > { %v1937_v39 = vpop.eup %1936  ;;  %1467 = vst [vmem:[%s2639_s17 + $0x190] sm:$0xff] %v1211_v32  ;;  %v1213_v40 = vmul.f32 %v957_v30, %v2842_v49  ;;  %v959_v41 = vadd.f32 1.0, %v1935_v34  ;;  %1956 = vtanh.f32 %v2920_v57  ;;  %v2992_v29 = vmul.f32 0.5, %v214_v4  ;;  %v218_v30 = vld [vmem:[%s2562_s30 + $0x288] sm:$0xff] }
  0x7d   : > { %v1939_v44 = vpop.eup %1938  ;;  %1468 = vst [vmem:[%s2639_s17 + $0x198] sm:$0xff] %v1212_v36  ;;  %v1214_v45 = vmul.f32 %v958_v35, %v2848_v54  ;;  %v960_v46 = vadd.f32 1.0, %v1937_v39  ;;  %1958 = vtanh.f32 %v2926_v62  ;;  %v2998_v32 = vmul.f32 0.5, %v215_v9  ;;  %v219_v35 = vld [vmem:[%s2562_s30 + $0x290] sm:$0xff] }
  0x7e   : > { %v1941_v49 = vpop.eup %1940  ;;  %1469 = vst [vmem:[%s2639_s17 + $0x1a0] sm:$0xff] %v1213_v40  ;;  %v1215_v50 = vmul.f32 %v959_v41, %v2854_v59  ;;  %v961_v51 = vadd.f32 1.0, %v1939_v44  ;;  %1960 = vtanh.f32 %v2932_v3  ;;  %v3004_v36 = vmul.f32 0.5, %v216_v14  ;;  %v220_v41 = vld [vmem:[%s2562_s30 + $0x298] sm:$0xff] }
  0x7f   : > { %v1943_v54 = vpop.eup %1942  ;;  %1470 = vst [vmem:[%s2639_s17 + $0x1a8] sm:$0xff] %v1214_v45  ;;  %v1216_v55 = vmul.f32 %v960_v46, %v2860_v0  ;;  %v962_v56 = vadd.f32 1.0, %v1941_v49  ;;  %1962 = vtanh.f32 %v2938_v8  ;;  %v3010_v40 = vmul.f32 0.5, %v217_v22  ;;  %v221_v46 = vld [vmem:[%s2562_s30 + $0x2a0] sm:$0xff] }
  0x80   : > { %v1945_v59 = vpop.eup %1944  ;;  %1471 = vst [vmem:[%s2639_s17 + $0x1b0] sm:$0xff] %v1215_v50  ;;  %v1217_v60 = vmul.f32 %v961_v51, %v2866_v5  ;;  %v963_v61 = vadd.f32 1.0, %v1943_v54  ;;  %1964 = vtanh.f32 %v2944_v13  ;;  %v3016_v45 = vmul.f32 0.5, %v218_v30  ;;  %v222_v51 = vld [vmem:[%s2562_s30 + $0x2a8] sm:$0xff] }
  0x81   : > { %v1947_v0 = vpop.eup %1946  ;;  %1472 = vst [vmem:[%s2639_s17 + $0x1b8] sm:$0xff] %v1216_v55  ;;  %v1218_v1 = vmul.f32 %v962_v56, %v2872_v10  ;;  %v964_v2 = vadd.f32 1.0, %v1945_v59  ;;  %1966 = vtanh.f32 %v2950_v15  ;;  %v3022_v50 = vmul.f32 0.5, %v219_v35  ;;  %v223_v56 = vld [vmem:[%s2562_s30 + $0x2b0] sm:$0xff] }
  0x82   : > { %v1949_v5 = vpop.eup %1948  ;;  %1473 = vst [vmem:[%s2639_s17 + $0x1c0] sm:$0xff] %v1217_v60  ;;  %v1219_v6 = vmul.f32 %v963_v61, %v2878_v16  ;;  %v965_v7 = vadd.f32 1.0, %v1947_v0  ;;  %1968 = vtanh.f32 %v2956_v17  ;;  %v3028_v55 = vmul.f32 0.5, %v220_v41  ;;  %v224_v61 = vld [vmem:[%s2562_s30 + $0x2b8] sm:$0xff] }
  0x83   : > { %v1951_v10 = vpop.eup %1950  ;;  %1474 = vst [vmem:[%s2639_s17 + $0x1c8] sm:$0xff] %v1218_v1  ;;  %v1220_v11 = vmul.f32 %v964_v2, %v2884_v24  ;;  %v966_v12 = vadd.f32 1.0, %v1949_v5  ;;  %1970 = vtanh.f32 %v2962_v19  ;;  %v3034_v60 = vmul.f32 0.5, %v221_v46  ;;  %v225_v2 = vld [vmem:[%s2562_s30 + $0x2c0] sm:$0xff] }
  0x84   : > { %v1953_v16 = vpop.eup %1952  ;;  %1475 = vst [vmem:[%s2639_s17 + $0x1d0] sm:$0xff] %v1219_v6  ;;  %v1221_v18 = vmul.f32 %v965_v7, %v2890_v31  ;;  %v967_v20 = vadd.f32 1.0, %v1951_v10  ;;  %1972 = vtanh.f32 %v2968_v21  ;;  %v3040_v1 = vmul.f32 0.5, %v222_v51  ;;  %v226_v7 = vld [vmem:[%s2562_s30 + $0x2c8] sm:$0xff] }
  0x85   : > { %v1955_v24 = vpop.eup %1954  ;;  %1476 = vst [vmem:[%s2639_s17 + $0x1d8] sm:$0xff] %v1220_v11  ;;  %v1222_v26 = vmul.f32 %v966_v12, %v2896_v37  ;;  %v968_v28 = vadd.f32 1.0, %v1953_v16  ;;  %1974 = vtanh.f32 %v2974_v23  ;;  %v3046_v6 = vmul.f32 0.5, %v223_v56  ;;  %v227_v12 = vld [vmem:[%s2562_s30 + $0x2d0] sm:$0xff] }
  0x86   : > { %v1957_v31 = vpop.eup %1956  ;;  %1477 = vst [vmem:[%s2639_s17 + $0x1e0] sm:$0xff] %v1221_v18  ;;  %v1223_v33 = vmul.f32 %v967_v20, %v2902_v42  ;;  %v969_v34 = vadd.f32 1.0, %v1955_v24  ;;  %1976 = vtanh.f32 %v2980_v25  ;;  %v3052_v11 = vmul.f32 0.5, %v224_v61  ;;  %v228_v20 = vld [vmem:[%s2562_s30 + $0x2d8] sm:$0xff] }
  0x87   : > { %v1959_v37 = vpop.eup %1958  ;;  %1478 = vst [vmem:[%s2639_s17 + $0x1e8] sm:$0xff] %v1222_v26  ;;  %v1224_v38 = vmul.f32 %v968_v28, %v2908_v47  ;;  %v970_v39 = vadd.f32 1.0, %v1957_v31  ;;  %1978 = vtanh.f32 %v2986_v27  ;;  %v3058_v18 = vmul.f32 0.5, %v225_v2  ;;  %v229_v28 = vld [vmem:[%s2562_s30 + $0x2e0] sm:$0xff] }
  0x88   : > { %v1961_v42 = vpop.eup %1960  ;;  %1479 = vst [vmem:[%s2639_s17 + $0x1f0] sm:$0xff] %v1223_v33  ;;  %v1225_v43 = vmul.f32 %v969_v34, %v2914_v52  ;;  %v971_v44 = vadd.f32 1.0, %v1959_v37  ;;  %1980 = vtanh.f32 %v2992_v29  ;;  %v3064_v26 = vmul.f32 0.5, %v226_v7  ;;  %v230_v34 = vld [vmem:[%s2562_s30 + $0x2e8] sm:$0xff] }
  0x89   : > { %v1963_v47 = vpop.eup %1962  ;;  %1480 = vst [vmem:[%s2639_s17 + $0x1f8] sm:$0xff] %v1224_v38  ;;  %v1226_v48 = vmul.f32 %v970_v39, %v2920_v57  ;;  %v972_v49 = vadd.f32 1.0, %v1961_v42  ;;  %1982 = vtanh.f32 %v2998_v32  ;;  %v3070_v33 = vmul.f32 0.5, %v227_v12  ;;  %v231_v39 = vld [vmem:[%s2562_s30 + $0x2f0] sm:$0xff] }
  0x8a   : > { %v1965_v52 = vpop.eup %1964  ;;  %1481 = vst [vmem:[%s2639_s17 + $0x200] sm:$0xff] %v1225_v43  ;;  %v1227_v53 = vmul.f32 %v971_v44, %v2926_v62  ;;  %v973_v54 = vadd.f32 1.0, %v1963_v47  ;;  %1984 = vtanh.f32 %v3004_v36  ;;  %v3076_v38 = vmul.f32 0.5, %v228_v20  ;;  %v232_v44 = vld [vmem:[%s2562_s30 + $0x2f8] sm:$0xff] }
  0x8b   : > { %v1967_v57 = vpop.eup %1966  ;;  %1482 = vst [vmem:[%s2639_s17 + $0x208] sm:$0xff] %v1226_v48  ;;  %v1228_v58 = vmul.f32 %v972_v49, %v2932_v3  ;;  %v974_v59 = vadd.f32 1.0, %v1965_v52  ;;  %1986 = vtanh.f32 %v3010_v40  ;;  %v3082_v43 = vmul.f32 0.5, %v229_v28  ;;  %v233_v49 = vld [vmem:[%s2562_s30 + $0x300] sm:$0xff] }
  0x8c   : > { %v1969_v62 = vpop.eup %1968  ;;  %1483 = vst [vmem:[%s2639_s17 + $0x210] sm:$0xff] %v1227_v53  ;;  %v1229_v63 = vmul.f32 %v973_v54, %v2938_v8  ;;  %v975_v0 = vadd.f32 1.0, %v1967_v57  ;;  %1988 = vtanh.f32 %v3016_v45  ;;  %v3088_v48 = vmul.f32 0.5, %v230_v34  ;;  %v234_v54 = vld [vmem:[%s2562_s30 + $0x308] sm:$0xff] }
  0x8d   : > { %v1971_v3 = vpop.eup %1970  ;;  %1484 = vst [vmem:[%s2639_s17 + $0x218] sm:$0xff] %v1228_v58  ;;  %v1230_v4 = vmul.f32 %v974_v59, %v2944_v13  ;;  %v976_v5 = vadd.f32 1.0, %v1969_v62  ;;  %1990 = vtanh.f32 %v3022_v50  ;;  %v3094_v53 = vmul.f32 0.5, %v231_v39  ;;  %v235_v59 = vld [vmem:[%s2562_s30 + $0x310] sm:$0xff] }
  0x8e   : > { %v1973_v8 = vpop.eup %1972  ;;  %1485 = vst [vmem:[%s2639_s17 + $0x220] sm:$0xff] %v1229_v63  ;;  %v1231_v9 = vmul.f32 %v975_v0, %v2950_v15  ;;  %v977_v10 = vadd.f32 1.0, %v1971_v3  ;;  %1992 = vtanh.f32 %v3028_v55  ;;  %v3100_v58 = vmul.f32 0.5, %v232_v44  ;;  %v236_v0 = vld [vmem:[%s2562_s30 + $0x318] sm:$0xff] }
  0x8f   : > { %v1975_v13 = vpop.eup %1974  ;;  %1486 = vst [vmem:[%s2639_s17 + $0x228] sm:$0xff] %v1230_v4  ;;  %v1232_v14 = vmul.f32 %v976_v5, %v2956_v17  ;;  %v978_v16 = vadd.f32 1.0, %v1973_v8  ;;  %1994 = vtanh.f32 %v3034_v60  ;;  %v3106_v63 = vmul.f32 0.5, %v233_v49  ;;  %v237_v5 = vld [vmem:[%s2562_s30 + $0x320] sm:$0xff] }
  0x90   : > { %v1977_v15 = vpop.eup %1976  ;;  %1487 = vst [vmem:[%s2639_s17 + $0x230] sm:$0xff] %v1231_v9  ;;  %v1233_v22 = vmul.f32 %v977_v10, %v2962_v19  ;;  %v979_v24 = vadd.f32 1.0, %v1975_v13  ;;  %1996 = vtanh.f32 %v3040_v1  ;;  %v3112_v4 = vmul.f32 0.5, %v234_v54  ;;  %v238_v10 = vld [vmem:[%s2562_s30 + $0x328] sm:$0xff] }
  0x91   : > { %v1979_v17 = vpop.eup %1978  ;;  %1488 = vst [vmem:[%s2639_s17 + $0x238] sm:$0xff] %v1232_v14  ;;  %v1234_v30 = vmul.f32 %v978_v16, %v2968_v21  ;;  %v980_v31 = vadd.f32 1.0, %v1977_v15  ;;  %1998 = vtanh.f32 %v3046_v6  ;;  %v3118_v9 = vmul.f32 0.5, %v235_v59  ;;  %v239_v16 = vld [vmem:[%s2562_s30 + $0x330] sm:$0xff] }
  0x92   : > { %v1981_v19 = vpop.eup %1980  ;;  %1489 = vst [vmem:[%s2639_s17 + $0x240] sm:$0xff] %v1233_v22  ;;  %v1235_v35 = vmul.f32 %v979_v24, %v2974_v23  ;;  %v981_v37 = vadd.f32 1.0, %v1979_v17  ;;  %2000 = vtanh.f32 %v3052_v11  ;;  %v3124_v14 = vmul.f32 0.5, %v236_v0  ;;  %v240_v24 = vld [vmem:[%s2562_s30 + $0x338] sm:$0xff] }
  0x93   : > { %v1983_v21 = vpop.eup %1982  ;;  %1490 = vst [vmem:[%s2639_s17 + $0x248] sm:$0xff] %v1234_v30  ;;  %v1236_v41 = vmul.f32 %v980_v31, %v2980_v25  ;;  %v982_v42 = vadd.f32 1.0, %v1981_v19  ;;  %2002 = vtanh.f32 %v3058_v18  ;;  %v3130_v22 = vmul.f32 0.5, %v237_v5  ;;  %v241_v31 = vld [vmem:[%s2562_s30 + $0x340] sm:$0xff] }
  0x94   : > { %v1985_v23 = vpop.eup %1984  ;;  %1491 = vst [vmem:[%s2639_s17 + $0x250] sm:$0xff] %v1235_v35  ;;  %v1237_v46 = vmul.f32 %v981_v37, %v2986_v27  ;;  %v983_v47 = vadd.f32 1.0, %v1983_v21  ;;  %2004 = vtanh.f32 %v3064_v26  ;;  %v3136_v30 = vmul.f32 0.5, %v238_v10  ;;  %v242_v37 = vld [vmem:[%s2562_s30 + $0x348] sm:$0xff] }
  0x95   : > { %v1987_v25 = vpop.eup %1986  ;;  %1492 = vst [vmem:[%s2639_s17 + $0x258] sm:$0xff] %v1236_v41  ;;  %v1238_v51 = vmul.f32 %v982_v42, %v2992_v29  ;;  %v984_v52 = vadd.f32 1.0, %v1985_v23  ;;  %2006 = vtanh.f32 %v3070_v33  ;;  %v3142_v35 = vmul.f32 0.5, %v239_v16  ;;  %v243_v42 = vld [vmem:[%s2562_s30 + $0x350] sm:$0xff] }
  0x96   : > { %v1989_v27 = vpop.eup %1988  ;;  %1493 = vst [vmem:[%s2639_s17 + $0x260] sm:$0xff] %v1237_v46  ;;  %v1239_v56 = vmul.f32 %v983_v47, %v2998_v32  ;;  %v985_v57 = vadd.f32 1.0, %v1987_v25  ;;  %2008 = vtanh.f32 %v3076_v38  ;;  %v3148_v41 = vmul.f32 0.5, %v240_v24  ;;  %v244_v47 = vld [vmem:[%s2562_s30 + $0x358] sm:$0xff] }
  0x97   : > { %v1991_v29 = vpop.eup %1990  ;;  %1494 = vst [vmem:[%s2639_s17 + $0x268] sm:$0xff] %v1238_v51  ;;  %v1240_v61 = vmul.f32 %v984_v52, %v3004_v36  ;;  %v986_v62 = vadd.f32 1.0, %v1989_v27  ;;  %2010 = vtanh.f32 %v3082_v43  ;;  %v3154_v46 = vmul.f32 0.5, %v241_v31  ;;  %v245_v52 = vld [vmem:[%s2562_s30 + $0x360] sm:$0xff] }
  0x98   : > { %v1993_v32 = vpop.eup %1992  ;;  %1495 = vst [vmem:[%s2639_s17 + $0x270] sm:$0xff] %v1239_v56  ;;  %v1241_v2 = vmul.f32 %v985_v57, %v3010_v40  ;;  %v987_v3 = vadd.f32 1.0, %v1991_v29  ;;  %2012 = vtanh.f32 %v3088_v48  ;;  %v3160_v51 = vmul.f32 0.5, %v242_v37  ;;  %v246_v57 = vld [vmem:[%s2562_s30 + $0x368] sm:$0xff] }
  0x99   : > { %v1995_v36 = vpop.eup %1994  ;;  %1496 = vst [vmem:[%s2639_s17 + $0x278] sm:$0xff] %v1240_v61  ;;  %v1242_v7 = vmul.f32 %v986_v62, %v3016_v45  ;;  %v988_v8 = vadd.f32 1.0, %v1993_v32  ;;  %2014 = vtanh.f32 %v3094_v53  ;;  %v3166_v56 = vmul.f32 0.5, %v243_v42  ;;  %v247_v62 = vld [vmem:[%s2562_s30 + $0x370] sm:$0xff] }
  0x9a   : > { %v1997_v40 = vpop.eup %1996  ;;  %1497 = vst [vmem:[%s2639_s17 + $0x280] sm:$0xff] %v1241_v2  ;;  %v1243_v12 = vmul.f32 %v987_v3, %v3022_v50  ;;  %v989_v13 = vadd.f32 1.0, %v1995_v36  ;;  %2016 = vtanh.f32 %v3100_v58  ;;  %v3172_v61 = vmul.f32 0.5, %v244_v47  ;;  %v248_v3 = vld [vmem:[%s2562_s30 + $0x378] sm:$0xff] }
  0x9b   : > { %v1999_v45 = vpop.eup %1998  ;;  %1498 = vst [vmem:[%s2639_s17 + $0x288] sm:$0xff] %v1242_v7  ;;  %v1244_v20 = vmul.f32 %v988_v8, %v3028_v55  ;;  %v990_v15 = vadd.f32 1.0, %v1997_v40  ;;  %2018 = vtanh.f32 %v3106_v63  ;;  %v3178_v2 = vmul.f32 0.5, %v245_v52  ;;  %v249_v8 = vld [vmem:[%s2562_s30 + $0x380] sm:$0xff] }
  0x9c   : > { %v2001_v50 = vpop.eup %2000  ;;  %1499 = vst [vmem:[%s2639_s17 + $0x290] sm:$0xff] %v1243_v12  ;;  %v1245_v28 = vmul.f32 %v989_v13, %v3034_v60  ;;  %v991_v17 = vadd.f32 1.0, %v1999_v45  ;;  %2020 = vtanh.f32 %v3112_v4  ;;  %v3184_v7 = vmul.f32 0.5, %v246_v57  ;;  %v250_v13 = vld [vmem:[%s2562_s30 + $0x388] sm:$0xff] }
  0x9d   : > { %v2003_v55 = vpop.eup %2002  ;;  %1500 = vst [vmem:[%s2639_s17 + $0x298] sm:$0xff] %v1244_v20  ;;  %v1246_v34 = vmul.f32 %v990_v15, %v3040_v1  ;;  %v992_v19 = vadd.f32 1.0, %v2001_v50  ;;  %2022 = vtanh.f32 %v3118_v9  ;;  %v3190_v12 = vmul.f32 0.5, %v247_v62  ;;  %v251_v15 = vld [vmem:[%s2562_s30 + $0x390] sm:$0xff] }
  0x9e   : > { %v2005_v60 = vpop.eup %2004  ;;  %1501 = vst [vmem:[%s2639_s17 + $0x2a0] sm:$0xff] %v1245_v28  ;;  %v1247_v39 = vmul.f32 %v991_v17, %v3046_v6  ;;  %v993_v21 = vadd.f32 1.0, %v2003_v55  ;;  %2024 = vtanh.f32 %v3124_v14  ;;  %v3196_v20 = vmul.f32 0.5, %v248_v3  ;;  %v252_v17 = vld [vmem:[%s2562_s30 + $0x398] sm:$0xff] }
  0x9f   : > { %v2007_v1 = vpop.eup %2006  ;;  %1502 = vst [vmem:[%s2639_s17 + $0x2a8] sm:$0xff] %v1246_v34  ;;  %v1248_v44 = vmul.f32 %v992_v19, %v3052_v11  ;;  %v994_v23 = vadd.f32 1.0, %v2005_v60  ;;  %2026 = vtanh.f32 %v3130_v22  ;;  %v3202_v28 = vmul.f32 0.5, %v249_v8  ;;  %v253_v19 = vld [vmem:[%s2562_s30 + $0x3a0] sm:$0xff] }
  0xa0   : > { %v2009_v6 = vpop.eup %2008  ;;  %1503 = vst [vmem:[%s2639_s17 + $0x2b0] sm:$0xff] %v1247_v39  ;;  %v1249_v49 = vmul.f32 %v993_v21, %v3058_v18  ;;  %v995_v25 = vadd.f32 1.0, %v2007_v1  ;;  %2028 = vtanh.f32 %v3136_v30  ;;  %v3208_v34 = vmul.f32 0.5, %v250_v13  ;;  %v254_v21 = vld [vmem:[%s2562_s30 + $0x3a8] sm:$0xff] }
  0xa1   : > { %v2011_v11 = vpop.eup %2010  ;;  %1504 = vst [vmem:[%s2639_s17 + $0x2b8] sm:$0xff] %v1248_v44  ;;  %v1250_v54 = vmul.f32 %v994_v23, %v3064_v26  ;;  %v996_v27 = vadd.f32 1.0, %v2009_v6  ;;  %2030 = vtanh.f32 %v3142_v35  ;;  %v3214_v39 = vmul.f32 0.5, %v251_v15  ;;  %v255_v23 = vld [vmem:[%s2562_s30 + $0x3b0] sm:$0xff] }
  0xa2   : > { %v2013_v18 = vpop.eup %2012  ;;  %1505 = vst [vmem:[%s2639_s17 + $0x2c0] sm:$0xff] %v1249_v49  ;;  %v1251_v59 = vmul.f32 %v995_v25, %v3070_v33  ;;  %v997_v29 = vadd.f32 1.0, %v2011_v11  ;;  %2032 = vtanh.f32 %v3148_v41  ;;  %v3220_v44 = vmul.f32 0.5, %v252_v17  ;;  %v256_v25 = vld [vmem:[%s2562_s30 + $0x3b8] sm:$0xff] }
  0xa3   : > { %v2015_v26 = vpop.eup %2014  ;;  %1506 = vst [vmem:[%s2639_s17 + $0x2c8] sm:$0xff] %v1250_v54  ;;  %v1252_v0 = vmul.f32 %v996_v27, %v3076_v38  ;;  %v998_v32 = vadd.f32 1.0, %v2013_v18  ;;  %2034 = vtanh.f32 %v3154_v46  ;;  %v3226_v49 = vmul.f32 0.5, %v253_v19  ;;  %v257_v27 = vld [vmem:[%s2562_s30 + $0x3c0] sm:$0xff] }
  0xa4   : > { %v2017_v33 = vpop.eup %2016  ;;  %1507 = vst [vmem:[%s2639_s17 + $0x2d0] sm:$0xff] %v1251_v59  ;;  %v1253_v5 = vmul.f32 %v997_v29, %v3082_v43  ;;  %v999_v36 = vadd.f32 1.0, %v2015_v26  ;;  %2036 = vtanh.f32 %v3160_v51  ;;  %v3232_v54 = vmul.f32 0.5, %v254_v21  ;;  %v258_v29 = vld [vmem:[%s2562_s30 + $0x3c8] sm:$0xff] }
  0xa5   : > { %v2019_v38 = vpop.eup %2018  ;;  %1508 = vst [vmem:[%s2639_s17 + $0x2d8] sm:$0xff] %v1252_v0  ;;  %v1254_v10 = vmul.f32 %v998_v32, %v3088_v48  ;;  %v1000_v40 = vadd.f32 1.0, %v2017_v33  ;;  %2038 = vtanh.f32 %v3166_v56  ;;  %v3238_v59 = vmul.f32 0.5, %v255_v23  ;;  %v259_v32 = vld [vmem:[%s2562_s30 + $0x3d0] sm:$0xff] }
  0xa6   : > { %v2021_v43 = vpop.eup %2020  ;;  %1509 = vst [vmem:[%s2639_s17 + $0x2e0] sm:$0xff] %v1253_v5  ;;  %v1255_v16 = vmul.f32 %v999_v36, %v3094_v53  ;;  %v1001_v45 = vadd.f32 1.0, %v2019_v38  ;;  %2040 = vtanh.f32 %v3172_v61  ;;  %v3244_v0 = vmul.f32 0.5, %v256_v25  ;;  %v260_v36 = vld [vmem:[%s2562_s30 + $0x3d8] sm:$0xff] }
  0xa7   : > { %v2023_v48 = vpop.eup %2022  ;;  %1510 = vst [vmem:[%s2639_s17 + $0x2e8] sm:$0xff] %v1254_v10  ;;  %v1256_v24 = vmul.f32 %v1000_v40, %v3100_v58  ;;  %v1002_v50 = vadd.f32 1.0, %v2021_v43  ;;  %2042 = vtanh.f32 %v3178_v2  ;;  %v3250_v5 = vmul.f32 0.5, %v257_v27  ;;  %v261_v40 = vld [vmem:[%s2562_s30 + $0x3e0] sm:$0xff] }
  0xa8   : > { %v2025_v53 = vpop.eup %2024  ;;  %1511 = vst [vmem:[%s2639_s17 + $0x2f0] sm:$0xff] %v1255_v16  ;;  %v1257_v31 = vmul.f32 %v1001_v45, %v3106_v63  ;;  %v1003_v55 = vadd.f32 1.0, %v2023_v48  ;;  %2044 = vtanh.f32 %v3184_v7  ;;  %v3256_v10 = vmul.f32 0.5, %v258_v29  ;;  %v262_v45 = vld [vmem:[%s2562_s30 + $0x3e8] sm:$0xff] }
  0xa9   : > { %v2027_v58 = vpop.eup %2026  ;;  %1512 = vst [vmem:[%s2639_s17 + $0x2f8] sm:$0xff] %v1256_v24  ;;  %v1258_v37 = vmul.f32 %v1002_v50, %v3112_v4  ;;  %v1004_v60 = vadd.f32 1.0, %v2025_v53  ;;  %2046 = vtanh.f32 %v3190_v12  ;;  %v3262_v16 = vmul.f32 0.5, %v259_v32  ;;  %v263_v50 = vld [vmem:[%s2562_s30 + $0x3f0] sm:$0xff] }
  0xaa   : > { %v2029_v63 = vpop.eup %2028  ;;  %1513 = vst [vmem:[%s2639_s17 + $0x300] sm:$0xff] %v1257_v31  ;;  %v1259_v42 = vmul.f32 %v1003_v55, %v3118_v9  ;;  %v1005_v1 = vadd.f32 1.0, %v2027_v58  ;;  %2048 = vtanh.f32 %v3196_v20  ;;  %v3268_v24 = vmul.f32 0.5, %v260_v36  ;;  %v264_v55 = vld [vmem:[%s2562_s30 + $0x3f8] sm:$0xff] }
  0xab   : > { %v2031_v4 = vpop.eup %2030  ;;  %1514 = vst [vmem:[%s2639_s17 + $0x308] sm:$0xff] %v1258_v37  ;;  %v1260_v47 = vmul.f32 %v1004_v60, %v3124_v14  ;;  %v1006_v6 = vadd.f32 1.0, %v2029_v63  ;;  %2050 = vtanh.f32 %v3202_v28  ;;  %v3274_v31 = vmul.f32 0.5, %v261_v40  ;;  %v265_v60 = vld [vmem:[%s2562_s30 + $0x400] sm:$0xff] }
  0xac   : > { %v2033_v9 = vpop.eup %2032  ;;  %1515 = vst [vmem:[%s2639_s17 + $0x310] sm:$0xff] %v1259_v42  ;;  %v1261_v52 = vmul.f32 %v1005_v1, %v3130_v22  ;;  %v1007_v11 = vadd.f32 1.0, %v2031_v4  ;;  %2052 = vtanh.f32 %v3208_v34  ;;  %v3280_v37 = vmul.f32 0.5, %v262_v45  ;;  %v266_v1 = vld [vmem:[%s2562_s30 + $0x408] sm:$0xff] }
  0xad   : > { %v2035_v14 = vpop.eup %2034  ;;  %1516 = vst [vmem:[%s2639_s17 + $0x318] sm:$0xff] %v1260_v47  ;;  %v1262_v57 = vmul.f32 %v1006_v6, %v3136_v30  ;;  %v1008_v18 = vadd.f32 1.0, %v2033_v9  ;;  %2054 = vtanh.f32 %v3214_v39  ;;  %v3286_v42 = vmul.f32 0.5, %v263_v50  ;;  %v267_v6 = vld [vmem:[%s2562_s30 + $0x410] sm:$0xff] }
  0xae   : > { %v2037_v22 = vpop.eup %2036  ;;  %1517 = vst [vmem:[%s2639_s17 + $0x320] sm:$0xff] %v1261_v52  ;;  %v1263_v62 = vmul.f32 %v1007_v11, %v3142_v35  ;;  %v1009_v26 = vadd.f32 1.0, %v2035_v14  ;;  %2056 = vtanh.f32 %v3220_v44  ;;  %v3292_v47 = vmul.f32 0.5, %v264_v55  ;;  %v268_v11 = vld [vmem:[%s2562_s30 + $0x418] sm:$0xff] }
  0xaf   : > { %v2039_v30 = vpop.eup %2038  ;;  %1518 = vst [vmem:[%s2639_s17 + $0x328] sm:$0xff] %v1262_v57  ;;  %v1264_v3 = vmul.f32 %v1008_v18, %v3148_v41  ;;  %v1010_v33 = vadd.f32 1.0, %v2037_v22  ;;  %2058 = vtanh.f32 %v3226_v49  ;;  %v3298_v52 = vmul.f32 0.5, %v265_v60  ;;  %v269_v18 = vld [vmem:[%s2562_s30 + $0x420] sm:$0xff] }
  0xb0   : > { %v2041_v35 = vpop.eup %2040  ;;  %1519 = vst [vmem:[%s2639_s17 + $0x330] sm:$0xff] %v1263_v62  ;;  %v1265_v8 = vmul.f32 %v1009_v26, %v3154_v46  ;;  %v1011_v38 = vadd.f32 1.0, %v2039_v30  ;;  %2060 = vtanh.f32 %v3232_v54  ;;  %v3304_v57 = vmul.f32 0.5, %v266_v1  ;;  %v270_v26 = vld [vmem:[%s2562_s30 + $0x428] sm:$0xff] }
  0xb1   : > { %v2043_v41 = vpop.eup %2042  ;;  %1520 = vst [vmem:[%s2639_s17 + $0x338] sm:$0xff] %v1264_v3  ;;  %v1266_v13 = vmul.f32 %v1010_v33, %v3160_v51  ;;  %v1012_v43 = vadd.f32 1.0, %v2041_v35  ;;  %2062 = vtanh.f32 %v3238_v59  ;;  %v3310_v62 = vmul.f32 0.5, %v267_v6  ;;  %v271_v33 = vld [vmem:[%s2562_s30 + $0x430] sm:$0xff] }
  0xb2   : > { %v2045_v46 = vpop.eup %2044  ;;  %1521 = vst [vmem:[%s2639_s17 + $0x340] sm:$0xff] %v1265_v8  ;;  %v1267_v15 = vmul.f32 %v1011_v38, %v3166_v56  ;;  %v1013_v48 = vadd.f32 1.0, %v2043_v41  ;;  %2064 = vtanh.f32 %v3244_v0  ;;  %v3316_v3 = vmul.f32 0.5, %v268_v11  ;;  %v272_v38 = vld [vmem:[%s2562_s30 + $0x438] sm:$0xff] }
  0xb3   : > { %v2047_v51 = vpop.eup %2046  ;;  %1522 = vst [vmem:[%s2639_s17 + $0x348] sm:$0xff] %v1266_v13  ;;  %v1268_v17 = vmul.f32 %v1012_v43, %v3172_v61  ;;  %v1014_v53 = vadd.f32 1.0, %v2045_v46  ;;  %2066 = vtanh.f32 %v3250_v5  ;;  %v3322_v8 = vmul.f32 0.5, %v269_v18  ;;  %v273_v43 = vld [vmem:[%s2562_s30 + $0x440] sm:$0xff] }
  0xb4   : > { %v2049_v56 = vpop.eup %2048  ;;  %1523 = vst [vmem:[%s2639_s17 + $0x350] sm:$0xff] %v1267_v15  ;;  %v1269_v19 = vmul.f32 %v1013_v48, %v3178_v2  ;;  %v1015_v58 = vadd.f32 1.0, %v2047_v51  ;;  %2068 = vtanh.f32 %v3256_v10  ;;  %v3328_v13 = vmul.f32 0.5, %v270_v26  ;;  %v274_v48 = vld [vmem:[%s2562_s30 + $0x448] sm:$0xff] }
  0xb5   : > { %v2051_v61 = vpop.eup %2050  ;;  %1524 = vst [vmem:[%s2639_s17 + $0x358] sm:$0xff] %v1268_v17  ;;  %v1270_v21 = vmul.f32 %v1014_v53, %v3184_v7  ;;  %v1016_v63 = vadd.f32 1.0, %v2049_v56  ;;  %2070 = vtanh.f32 %v3262_v16  ;;  %v3334_v15 = vmul.f32 0.5, %v271_v33  ;;  %v275_v53 = vld [vmem:[%s2562_s30 + $0x450] sm:$0xff] }
  0xb6   : > { %v2053_v2 = vpop.eup %2052  ;;  %1525 = vst [vmem:[%s2639_s17 + $0x360] sm:$0xff] %v1269_v19  ;;  %v1271_v23 = vmul.f32 %v1015_v58, %v3190_v12  ;;  %v1017_v4 = vadd.f32 1.0, %v2051_v61  ;;  %2072 = vtanh.f32 %v3268_v24  ;;  %v3340_v17 = vmul.f32 0.5, %v272_v38  ;;  %v276_v58 = vld [vmem:[%s2562_s30 + $0x458] sm:$0xff] }
  0xb7   : > { %v2055_v7 = vpop.eup %2054  ;;  %1526 = vst [vmem:[%s2639_s17 + $0x368] sm:$0xff] %v1270_v21  ;;  %v1272_v25 = vmul.f32 %v1016_v63, %v3196_v20  ;;  %v1018_v9 = vadd.f32 1.0, %v2053_v2  ;;  %2074 = vtanh.f32 %v3274_v31  ;;  %v3346_v19 = vmul.f32 0.5, %v273_v43  ;;  %v277_v63 = vld [vmem:[%s2562_s30 + $0x460] sm:$0xff] }
  0xb8   : > { %v2057_v12 = vpop.eup %2056  ;;  %1527 = vst [vmem:[%s2639_s17 + $0x370] sm:$0xff] %v1271_v23  ;;  %v1273_v27 = vmul.f32 %v1017_v4, %v3202_v28  ;;  %v1019_v14 = vadd.f32 1.0, %v2055_v7  ;;  %2076 = vtanh.f32 %v3280_v37  ;;  %v3352_v21 = vmul.f32 0.5, %v274_v48  ;;  %v278_v4 = vld [vmem:[%s2562_s30 + $0x468] sm:$0xff] }
  0xb9   : > { %v2059_v20 = vpop.eup %2058  ;;  %1528 = vst [vmem:[%s2639_s17 + $0x378] sm:$0xff] %v1272_v25  ;;  %v1274_v29 = vmul.f32 %v1018_v9, %v3208_v34  ;;  %v1020_v22 = vadd.f32 1.0, %v2057_v12  ;;  %2078 = vtanh.f32 %v3286_v42  ;;  %v3358_v23 = vmul.f32 0.5, %v275_v53  ;;  %v279_v9 = vld [vmem:[%s2562_s30 + $0x470] sm:$0xff] }
  0xba   : > { %v2061_v28 = vpop.eup %2060  ;;  %1529 = vst [vmem:[%s2639_s17 + $0x380] sm:$0xff] %v1273_v27  ;;  %v1275_v32 = vmul.f32 %v1019_v14, %v3214_v39  ;;  %v1021_v30 = vadd.f32 1.0, %v2059_v20  ;;  %2080 = vtanh.f32 %v3292_v47  ;;  %v3364_v25 = vmul.f32 0.5, %v276_v58  ;;  %v280_v14 = vld [vmem:[%s2562_s30 + $0x478] sm:$0xff] }
  0xbb   : > { %v2063_v34 = vpop.eup %2062  ;;  %1530 = vst [vmem:[%s2639_s17 + $0x388] sm:$0xff] %v1274_v29  ;;  %v1276_v36 = vmul.f32 %v1020_v22, %v3220_v44  ;;  %v1022_v35 = vadd.f32 1.0, %v2061_v28  ;;  %2082 = vtanh.f32 %v3298_v52  ;;  %v3370_v27 = vmul.f32 0.5, %v277_v63  ;;  %v281_v22 = vld [vmem:[%s2562_s30 + $0x480] sm:$0xff] }
  0xbc   : > { %v2065_v39 = vpop.eup %2064  ;;  %1531 = vst [vmem:[%s2639_s17 + $0x390] sm:$0xff] %v1275_v32  ;;  %v1277_v40 = vmul.f32 %v1021_v30, %v3226_v49  ;;  %v1023_v41 = vadd.f32 1.0, %v2063_v34  ;;  %2084 = vtanh.f32 %v3304_v57  ;;  %v3376_v29 = vmul.f32 0.5, %v278_v4  ;;  %v282_v30 = vld [vmem:[%s2562_s30 + $0x488] sm:$0xff] }
  0xbd   : > { %v2067_v44 = vpop.eup %2066  ;;  %1532 = vst [vmem:[%s2639_s17 + $0x398] sm:$0xff] %v1276_v36  ;;  %v1278_v45 = vmul.f32 %v1022_v35, %v3232_v54  ;;  %v1024_v46 = vadd.f32 1.0, %v2065_v39  ;;  %2086 = vtanh.f32 %v3310_v62  ;;  %v3382_v32 = vmul.f32 0.5, %v279_v9  ;;  %v283_v35 = vld [vmem:[%s2562_s30 + $0x490] sm:$0xff] }
  0xbe   : > { %v2069_v49 = vpop.eup %2068  ;;  %1533 = vst [vmem:[%s2639_s17 + $0x3a0] sm:$0xff] %v1277_v40  ;;  %v1279_v50 = vmul.f32 %v1023_v41, %v3238_v59  ;;  %v1025_v51 = vadd.f32 1.0, %v2067_v44  ;;  %2088 = vtanh.f32 %v3316_v3  ;;  %v3388_v36 = vmul.f32 0.5, %v280_v14  ;;  %v284_v41 = vld [vmem:[%s2562_s30 + $0x498] sm:$0xff] }
  0xbf   : > { %v2071_v54 = vpop.eup %2070  ;;  %1534 = vst [vmem:[%s2639_s17 + $0x3a8] sm:$0xff] %v1278_v45  ;;  %v1280_v55 = vmul.f32 %v1024_v46, %v3244_v0  ;;  %v1026_v56 = vadd.f32 1.0, %v2069_v49  ;;  %2090 = vtanh.f32 %v3322_v8  ;;  %v3394_v40 = vmul.f32 0.5, %v281_v22  ;;  %v285_v46 = vld [vmem:[%s2562_s30 + $0x4a0] sm:$0xff] }
  0xc0   : > { %v2073_v59 = vpop.eup %2072  ;;  %1535 = vst [vmem:[%s2639_s17 + $0x3b0] sm:$0xff] %v1279_v50  ;;  %v1281_v60 = vmul.f32 %v1025_v51, %v3250_v5  ;;  %v1027_v61 = vadd.f32 1.0, %v2071_v54  ;;  %2092 = vtanh.f32 %v3328_v13  ;;  %v3400_v45 = vmul.f32 0.5, %v282_v30  ;;  %v286_v51 = vld [vmem:[%s2562_s30 + $0x4a8] sm:$0xff] }
  0xc1   : > { %v2075_v0 = vpop.eup %2074  ;;  %1536 = vst [vmem:[%s2639_s17 + $0x3b8] sm:$0xff] %v1280_v55  ;;  %v1282_v1 = vmul.f32 %v1026_v56, %v3256_v10  ;;  %v1028_v2 = vadd.f32 1.0, %v2073_v59  ;;  %2094 = vtanh.f32 %v3334_v15  ;;  %v3406_v50 = vmul.f32 0.5, %v283_v35  ;;  %v287_v56 = vld [vmem:[%s2562_s30 + $0x4b0] sm:$0xff] }
  0xc2   : > { %v2077_v5 = vpop.eup %2076  ;;  %1537 = vst [vmem:[%s2639_s17 + $0x3c0] sm:$0xff] %v1281_v60  ;;  %v1283_v6 = vmul.f32 %v1027_v61, %v3262_v16  ;;  %v1029_v7 = vadd.f32 1.0, %v2075_v0  ;;  %2096 = vtanh.f32 %v3340_v17  ;;  %v3412_v55 = vmul.f32 0.5, %v284_v41  ;;  %v288_v61 = vld [vmem:[%s2562_s30 + $0x4b8] sm:$0xff] }
  0xc3   : > { %v2079_v10 = vpop.eup %2078  ;;  %1538 = vst [vmem:[%s2639_s17 + $0x3c8] sm:$0xff] %v1282_v1  ;;  %v1284_v11 = vmul.f32 %v1028_v2, %v3268_v24  ;;  %v1030_v12 = vadd.f32 1.0, %v2077_v5  ;;  %2098 = vtanh.f32 %v3346_v19  ;;  %v3418_v60 = vmul.f32 0.5, %v285_v46  ;;  %v289_v2 = vld [vmem:[%s2562_s30 + $0x4c0] sm:$0xff] }
  0xc4   : > { %v2081_v16 = vpop.eup %2080  ;;  %1539 = vst [vmem:[%s2639_s17 + $0x3d0] sm:$0xff] %v1283_v6  ;;  %v1285_v18 = vmul.f32 %v1029_v7, %v3274_v31  ;;  %v1031_v20 = vadd.f32 1.0, %v2079_v10  ;;  %2100 = vtanh.f32 %v3352_v21  ;;  %v3424_v1 = vmul.f32 0.5, %v286_v51  ;;  %v290_v7 = vld [vmem:[%s2562_s30 + $0x4c8] sm:$0xff] }
  0xc5   : > { %v2083_v24 = vpop.eup %2082  ;;  %1540 = vst [vmem:[%s2639_s17 + $0x3d8] sm:$0xff] %v1284_v11  ;;  %v1286_v26 = vmul.f32 %v1030_v12, %v3280_v37  ;;  %v1032_v28 = vadd.f32 1.0, %v2081_v16  ;;  %2102 = vtanh.f32 %v3358_v23  ;;  %v3430_v6 = vmul.f32 0.5, %v287_v56  ;;  %v291_v12 = vld [vmem:[%s2562_s30 + $0x4d0] sm:$0xff] }
  0xc6   : > { %v2085_v31 = vpop.eup %2084  ;;  %1541 = vst [vmem:[%s2639_s17 + $0x3e0] sm:$0xff] %v1285_v18  ;;  %v1287_v33 = vmul.f32 %v1031_v20, %v3286_v42  ;;  %v1033_v34 = vadd.f32 1.0, %v2083_v24  ;;  %2104 = vtanh.f32 %v3364_v25  ;;  %v3436_v11 = vmul.f32 0.5, %v288_v61  ;;  %v292_v20 = vld [vmem:[%s2562_s30 + $0x4d8] sm:$0xff] }
  0xc7   : > { %v2087_v37 = vpop.eup %2086  ;;  %1542 = vst [vmem:[%s2639_s17 + $0x3e8] sm:$0xff] %v1286_v26  ;;  %v1288_v38 = vmul.f32 %v1032_v28, %v3292_v47  ;;  %v1034_v39 = vadd.f32 1.0, %v2085_v31  ;;  %2106 = vtanh.f32 %v3370_v27  ;;  %v3442_v18 = vmul.f32 0.5, %v289_v2  ;;  %v293_v28 = vld [vmem:[%s2562_s30 + $0x4e0] sm:$0xff] }
  0xc8   : > { %v2089_v42 = vpop.eup %2088  ;;  %1543 = vst [vmem:[%s2639_s17 + $0x3f0] sm:$0xff] %v1287_v33  ;;  %v1289_v43 = vmul.f32 %v1033_v34, %v3298_v52  ;;  %v1035_v44 = vadd.f32 1.0, %v2087_v37  ;;  %2108 = vtanh.f32 %v3376_v29  ;;  %v3448_v26 = vmul.f32 0.5, %v290_v7  ;;  %v294_v34 = vld [vmem:[%s2562_s30 + $0x4e8] sm:$0xff] }
  0xc9   : > { %v2091_v47 = vpop.eup %2090  ;;  %1544 = vst [vmem:[%s2639_s17 + $0x3f8] sm:$0xff] %v1288_v38  ;;  %v1290_v48 = vmul.f32 %v1034_v39, %v3304_v57  ;;  %v1036_v49 = vadd.f32 1.0, %v2089_v42  ;;  %2110 = vtanh.f32 %v3382_v32  ;;  %v3454_v33 = vmul.f32 0.5, %v291_v12  ;;  %v295_v39 = vld [vmem:[%s2562_s30 + $0x4f0] sm:$0xff] }
  0xca   : > { %v2093_v52 = vpop.eup %2092  ;;  %1545 = vst [vmem:[%s2639_s17 + $0x400] sm:$0xff] %v1289_v43  ;;  %v1291_v53 = vmul.f32 %v1035_v44, %v3310_v62  ;;  %v1037_v54 = vadd.f32 1.0, %v2091_v47  ;;  %2112 = vtanh.f32 %v3388_v36  ;;  %v3460_v38 = vmul.f32 0.5, %v292_v20  ;;  %v296_v44 = vld [vmem:[%s2562_s30 + $0x4f8] sm:$0xff] }
  0xcb   : > { %v2095_v57 = vpop.eup %2094  ;;  %1546 = vst [vmem:[%s2639_s17 + $0x408] sm:$0xff] %v1290_v48  ;;  %v1292_v58 = vmul.f32 %v1036_v49, %v3316_v3  ;;  %v1038_v59 = vadd.f32 1.0, %v2093_v52  ;;  %2114 = vtanh.f32 %v3394_v40  ;;  %v3466_v43 = vmul.f32 0.5, %v293_v28  ;;  %v297_v49 = vld [vmem:[%s2562_s30 + $0x500] sm:$0xff] }
  0xcc   : > { %v2097_v62 = vpop.eup %2096  ;;  %1547 = vst [vmem:[%s2639_s17 + $0x410] sm:$0xff] %v1291_v53  ;;  %v1293_v63 = vmul.f32 %v1037_v54, %v3322_v8  ;;  %v1039_v0 = vadd.f32 1.0, %v2095_v57  ;;  %2116 = vtanh.f32 %v3400_v45  ;;  %v3472_v48 = vmul.f32 0.5, %v294_v34  ;;  %v298_v54 = vld [vmem:[%s2562_s30 + $0x508] sm:$0xff] }
  0xcd   : > { %v2099_v3 = vpop.eup %2098  ;;  %1548 = vst [vmem:[%s2639_s17 + $0x418] sm:$0xff] %v1292_v58  ;;  %v1294_v4 = vmul.f32 %v1038_v59, %v3328_v13  ;;  %v1040_v5 = vadd.f32 1.0, %v2097_v62  ;;  %2118 = vtanh.f32 %v3406_v50  ;;  %v3478_v53 = vmul.f32 0.5, %v295_v39  ;;  %v299_v59 = vld [vmem:[%s2562_s30 + $0x510] sm:$0xff] }
  0xce   : > { %v2101_v8 = vpop.eup %2100  ;;  %1549 = vst [vmem:[%s2639_s17 + $0x420] sm:$0xff] %v1293_v63  ;;  %v1295_v9 = vmul.f32 %v1039_v0, %v3334_v15  ;;  %v1041_v10 = vadd.f32 1.0, %v2099_v3  ;;  %2120 = vtanh.f32 %v3412_v55  ;;  %v3484_v58 = vmul.f32 0.5, %v296_v44  ;;  %v300_v0 = vld [vmem:[%s2562_s30 + $0x518] sm:$0xff] }
  0xcf   : > { %v2103_v13 = vpop.eup %2102  ;;  %1550 = vst [vmem:[%s2639_s17 + $0x428] sm:$0xff] %v1294_v4  ;;  %v1296_v14 = vmul.f32 %v1040_v5, %v3340_v17  ;;  %v1042_v16 = vadd.f32 1.0, %v2101_v8  ;;  %2122 = vtanh.f32 %v3418_v60  ;;  %v3490_v63 = vmul.f32 0.5, %v297_v49  ;;  %v301_v5 = vld [vmem:[%s2562_s30 + $0x520] sm:$0xff] }
  0xd0   : > { %v2105_v15 = vpop.eup %2104  ;;  %1551 = vst [vmem:[%s2639_s17 + $0x430] sm:$0xff] %v1295_v9  ;;  %v1297_v22 = vmul.f32 %v1041_v10, %v3346_v19  ;;  %v1043_v24 = vadd.f32 1.0, %v2103_v13  ;;  %2124 = vtanh.f32 %v3424_v1  ;;  %v3496_v4 = vmul.f32 0.5, %v298_v54  ;;  %v302_v10 = vld [vmem:[%s2562_s30 + $0x528] sm:$0xff] }
  0xd1   : > { %v2107_v17 = vpop.eup %2106  ;;  %1552 = vst [vmem:[%s2639_s17 + $0x438] sm:$0xff] %v1296_v14  ;;  %v1298_v30 = vmul.f32 %v1042_v16, %v3352_v21  ;;  %v1044_v31 = vadd.f32 1.0, %v2105_v15  ;;  %2126 = vtanh.f32 %v3430_v6  ;;  %v3502_v9 = vmul.f32 0.5, %v299_v59  ;;  %v303_v16 = vld [vmem:[%s2562_s30 + $0x530] sm:$0xff] }
  0xd2   : > { %v2109_v19 = vpop.eup %2108  ;;  %1553 = vst [vmem:[%s2639_s17 + $0x440] sm:$0xff] %v1297_v22  ;;  %v1299_v35 = vmul.f32 %v1043_v24, %v3358_v23  ;;  %v1045_v37 = vadd.f32 1.0, %v2107_v17  ;;  %2128 = vtanh.f32 %v3436_v11  ;;  %v3508_v14 = vmul.f32 0.5, %v300_v0  ;;  %v304_v24 = vld [vmem:[%s2562_s30 + $0x538] sm:$0xff] }
  0xd3   : > { %v2111_v21 = vpop.eup %2110  ;;  %1554 = vst [vmem:[%s2639_s17 + $0x448] sm:$0xff] %v1298_v30  ;;  %v1300_v41 = vmul.f32 %v1044_v31, %v3364_v25  ;;  %v1046_v42 = vadd.f32 1.0, %v2109_v19  ;;  %2130 = vtanh.f32 %v3442_v18  ;;  %v3514_v22 = vmul.f32 0.5, %v301_v5  ;;  %v305_v31 = vld [vmem:[%s2562_s30 + $0x540] sm:$0xff] }
  0xd4   : > { %v2113_v23 = vpop.eup %2112  ;;  %1555 = vst [vmem:[%s2639_s17 + $0x450] sm:$0xff] %v1299_v35  ;;  %v1301_v46 = vmul.f32 %v1045_v37, %v3370_v27  ;;  %v1047_v47 = vadd.f32 1.0, %v2111_v21  ;;  %2132 = vtanh.f32 %v3448_v26  ;;  %v3520_v30 = vmul.f32 0.5, %v302_v10  ;;  %v306_v37 = vld [vmem:[%s2562_s30 + $0x548] sm:$0xff] }
  0xd5   : > { %v2115_v25 = vpop.eup %2114  ;;  %1556 = vst [vmem:[%s2639_s17 + $0x458] sm:$0xff] %v1300_v41  ;;  %v1302_v51 = vmul.f32 %v1046_v42, %v3376_v29  ;;  %v1048_v52 = vadd.f32 1.0, %v2113_v23  ;;  %2134 = vtanh.f32 %v3454_v33  ;;  %v3526_v35 = vmul.f32 0.5, %v303_v16  ;;  %v307_v42 = vld [vmem:[%s2562_s30 + $0x550] sm:$0xff] }
  0xd6   : > { %v2117_v27 = vpop.eup %2116  ;;  %1557 = vst [vmem:[%s2639_s17 + $0x460] sm:$0xff] %v1301_v46  ;;  %v1303_v56 = vmul.f32 %v1047_v47, %v3382_v32  ;;  %v1049_v57 = vadd.f32 1.0, %v2115_v25  ;;  %2136 = vtanh.f32 %v3460_v38  ;;  %v3532_v41 = vmul.f32 0.5, %v304_v24  ;;  %v308_v47 = vld [vmem:[%s2562_s30 + $0x558] sm:$0xff] }
  0xd7   : > { %v2119_v29 = vpop.eup %2118  ;;  %1558 = vst [vmem:[%s2639_s17 + $0x468] sm:$0xff] %v1302_v51  ;;  %v1304_v61 = vmul.f32 %v1048_v52, %v3388_v36  ;;  %v1050_v62 = vadd.f32 1.0, %v2117_v27  ;;  %2138 = vtanh.f32 %v3466_v43  ;;  %v3538_v46 = vmul.f32 0.5, %v305_v31  ;;  %v309_v52 = vld [vmem:[%s2562_s30 + $0x560] sm:$0xff] }
  0xd8   : > { %v2121_v32 = vpop.eup %2120  ;;  %1559 = vst [vmem:[%s2639_s17 + $0x470] sm:$0xff] %v1303_v56  ;;  %v1305_v2 = vmul.f32 %v1049_v57, %v3394_v40  ;;  %v1051_v3 = vadd.f32 1.0, %v2119_v29  ;;  %2140 = vtanh.f32 %v3472_v48  ;;  %v3544_v51 = vmul.f32 0.5, %v306_v37  ;;  %v310_v57 = vld [vmem:[%s2562_s30 + $0x568] sm:$0xff] }
  0xd9   : > { %v2123_v36 = vpop.eup %2122  ;;  %1560 = vst [vmem:[%s2639_s17 + $0x478] sm:$0xff] %v1304_v61  ;;  %v1306_v7 = vmul.f32 %v1050_v62, %v3400_v45  ;;  %v1052_v8 = vadd.f32 1.0, %v2121_v32  ;;  %2142 = vtanh.f32 %v3478_v53  ;;  %v3550_v56 = vmul.f32 0.5, %v307_v42  ;;  %v311_v62 = vld [vmem:[%s2562_s30 + $0x570] sm:$0xff] }
  0xda   : > { %v2125_v40 = vpop.eup %2124  ;;  %1561 = vst [vmem:[%s2639_s17 + $0x480] sm:$0xff] %v1305_v2  ;;  %v1307_v12 = vmul.f32 %v1051_v3, %v3406_v50  ;;  %v1053_v13 = vadd.f32 1.0, %v2123_v36  ;;  %2144 = vtanh.f32 %v3484_v58  ;;  %v3556_v61 = vmul.f32 0.5, %v308_v47  ;;  %v312_v3 = vld [vmem:[%s2562_s30 + $0x578] sm:$0xff] }
  0xdb   : > { %v2127_v45 = vpop.eup %2126  ;;  %1562 = vst [vmem:[%s2639_s17 + $0x488] sm:$0xff] %v1306_v7  ;;  %v1308_v20 = vmul.f32 %v1052_v8, %v3412_v55  ;;  %v1054_v15 = vadd.f32 1.0, %v2125_v40  ;;  %2146 = vtanh.f32 %v3490_v63  ;;  %v3562_v2 = vmul.f32 0.5, %v309_v52  ;;  %v313_v8 = vld [vmem:[%s2562_s30 + $0x580] sm:$0xff] }
  0xdc   : > { %v2129_v50 = vpop.eup %2128  ;;  %1563 = vst [vmem:[%s2639_s17 + $0x490] sm:$0xff] %v1307_v12  ;;  %v1309_v28 = vmul.f32 %v1053_v13, %v3418_v60  ;;  %v1055_v17 = vadd.f32 1.0, %v2127_v45  ;;  %2148 = vtanh.f32 %v3496_v4  ;;  %v3568_v7 = vmul.f32 0.5, %v310_v57  ;;  %v314_v13 = vld [vmem:[%s2562_s30 + $0x588] sm:$0xff] }
  0xdd   : > { %v2131_v55 = vpop.eup %2130  ;;  %1564 = vst [vmem:[%s2639_s17 + $0x498] sm:$0xff] %v1308_v20  ;;  %v1310_v34 = vmul.f32 %v1054_v15, %v3424_v1  ;;  %v1056_v19 = vadd.f32 1.0, %v2129_v50  ;;  %2150 = vtanh.f32 %v3502_v9  ;;  %v3574_v12 = vmul.f32 0.5, %v311_v62  ;;  %v315_v15 = vld [vmem:[%s2562_s30 + $0x590] sm:$0xff] }
  0xde   : > { %v2133_v60 = vpop.eup %2132  ;;  %1565 = vst [vmem:[%s2639_s17 + $0x4a0] sm:$0xff] %v1309_v28  ;;  %v1311_v39 = vmul.f32 %v1055_v17, %v3430_v6  ;;  %v1057_v21 = vadd.f32 1.0, %v2131_v55  ;;  %2152 = vtanh.f32 %v3508_v14  ;;  %v3580_v20 = vmul.f32 0.5, %v312_v3  ;;  %v316_v17 = vld [vmem:[%s2562_s30 + $0x598] sm:$0xff] }
  0xdf   : > { %v2135_v1 = vpop.eup %2134  ;;  %1566 = vst [vmem:[%s2639_s17 + $0x4a8] sm:$0xff] %v1310_v34  ;;  %v1312_v44 = vmul.f32 %v1056_v19, %v3436_v11  ;;  %v1058_v23 = vadd.f32 1.0, %v2133_v60  ;;  %2154 = vtanh.f32 %v3514_v22  ;;  %v3586_v28 = vmul.f32 0.5, %v313_v8  ;;  %v317_v19 = vld [vmem:[%s2562_s30 + $0x5a0] sm:$0xff] }
  0xe0   : > { %v2137_v6 = vpop.eup %2136  ;;  %1567 = vst [vmem:[%s2639_s17 + $0x4b0] sm:$0xff] %v1311_v39  ;;  %v1313_v49 = vmul.f32 %v1057_v21, %v3442_v18  ;;  %v1059_v25 = vadd.f32 1.0, %v2135_v1  ;;  %2156 = vtanh.f32 %v3520_v30  ;;  %v3592_v34 = vmul.f32 0.5, %v314_v13  ;;  %v318_v21 = vld [vmem:[%s2562_s30 + $0x5a8] sm:$0xff] }
  0xe1   : > { %v2139_v11 = vpop.eup %2138  ;;  %1568 = vst [vmem:[%s2639_s17 + $0x4b8] sm:$0xff] %v1312_v44  ;;  %v1314_v54 = vmul.f32 %v1058_v23, %v3448_v26  ;;  %v1060_v27 = vadd.f32 1.0, %v2137_v6  ;;  %2158 = vtanh.f32 %v3526_v35  ;;  %v3598_v39 = vmul.f32 0.5, %v315_v15  ;;  %v319_v23 = vld [vmem:[%s2562_s30 + $0x5b0] sm:$0xff] }
  0xe2   : > { %v2141_v18 = vpop.eup %2140  ;;  %1569 = vst [vmem:[%s2639_s17 + $0x4c0] sm:$0xff] %v1313_v49  ;;  %v1315_v59 = vmul.f32 %v1059_v25, %v3454_v33  ;;  %v1061_v29 = vadd.f32 1.0, %v2139_v11  ;;  %2160 = vtanh.f32 %v3532_v41  ;;  %v3604_v44 = vmul.f32 0.5, %v316_v17  ;;  %v320_v25 = vld [vmem:[%s2562_s30 + $0x5b8] sm:$0xff] }
  0xe3   : > { %v2143_v26 = vpop.eup %2142  ;;  %1570 = vst [vmem:[%s2639_s17 + $0x4c8] sm:$0xff] %v1314_v54  ;;  %v1316_v0 = vmul.f32 %v1060_v27, %v3460_v38  ;;  %v1062_v32 = vadd.f32 1.0, %v2141_v18  ;;  %2162 = vtanh.f32 %v3538_v46  ;;  %v3610_v49 = vmul.f32 0.5, %v317_v19  ;;  %v321_v27 = vld [vmem:[%s2562_s30 + $0x5c0] sm:$0xff] }
  0xe4   : > { %v2145_v33 = vpop.eup %2144  ;;  %1571 = vst [vmem:[%s2639_s17 + $0x4d0] sm:$0xff] %v1315_v59  ;;  %v1317_v5 = vmul.f32 %v1061_v29, %v3466_v43  ;;  %v1063_v36 = vadd.f32 1.0, %v2143_v26  ;;  %2164 = vtanh.f32 %v3544_v51  ;;  %v3616_v54 = vmul.f32 0.5, %v318_v21  ;;  %v322_v29 = vld [vmem:[%s2562_s30 + $0x5c8] sm:$0xff] }
  0xe5   : > { %v2147_v38 = vpop.eup %2146  ;;  %1572 = vst [vmem:[%s2639_s17 + $0x4d8] sm:$0xff] %v1316_v0  ;;  %v1318_v10 = vmul.f32 %v1062_v32, %v3472_v48  ;;  %v1064_v40 = vadd.f32 1.0, %v2145_v33  ;;  %2166 = vtanh.f32 %v3550_v56  ;;  %v3622_v59 = vmul.f32 0.5, %v319_v23  ;;  %v323_v32 = vld [vmem:[%s2562_s30 + $0x5d0] sm:$0xff] }
  0xe6   : > { %v2149_v43 = vpop.eup %2148  ;;  %1573 = vst [vmem:[%s2639_s17 + $0x4e0] sm:$0xff] %v1317_v5  ;;  %v1319_v16 = vmul.f32 %v1063_v36, %v3478_v53  ;;  %v1065_v45 = vadd.f32 1.0, %v2147_v38  ;;  %2168 = vtanh.f32 %v3556_v61  ;;  %v3628_v0 = vmul.f32 0.5, %v320_v25  ;;  %v324_v36 = vld [vmem:[%s2562_s30 + $0x5d8] sm:$0xff] }
  0xe7   : > { %v2151_v48 = vpop.eup %2150  ;;  %1574 = vst [vmem:[%s2639_s17 + $0x4e8] sm:$0xff] %v1318_v10  ;;  %v1320_v24 = vmul.f32 %v1064_v40, %v3484_v58  ;;  %v1066_v50 = vadd.f32 1.0, %v2149_v43  ;;  %2170 = vtanh.f32 %v3562_v2  ;;  %v3634_v5 = vmul.f32 0.5, %v321_v27  ;;  %v325_v40 = vld [vmem:[%s2562_s30 + $0x5e0] sm:$0xff] }
  0xe8   : > { %v2153_v53 = vpop.eup %2152  ;;  %1575 = vst [vmem:[%s2639_s17 + $0x4f0] sm:$0xff] %v1319_v16  ;;  %v1321_v31 = vmul.f32 %v1065_v45, %v3490_v63  ;;  %v1067_v55 = vadd.f32 1.0, %v2151_v48  ;;  %2172 = vtanh.f32 %v3568_v7  ;;  %v3640_v10 = vmul.f32 0.5, %v322_v29  ;;  %v326_v45 = vld [vmem:[%s2562_s30 + $0x5e8] sm:$0xff] }
  0xe9   : > { %v2155_v58 = vpop.eup %2154  ;;  %1576 = vst [vmem:[%s2639_s17 + $0x4f8] sm:$0xff] %v1320_v24  ;;  %v1322_v37 = vmul.f32 %v1066_v50, %v3496_v4  ;;  %v1068_v60 = vadd.f32 1.0, %v2153_v53  ;;  %2174 = vtanh.f32 %v3574_v12  ;;  %v3646_v16 = vmul.f32 0.5, %v323_v32  ;;  %v327_v50 = vld [vmem:[%s2562_s30 + $0x5f0] sm:$0xff] }
  0xea   : > { %v2157_v63 = vpop.eup %2156  ;;  %1577 = vst [vmem:[%s2639_s17 + $0x500] sm:$0xff] %v1321_v31  ;;  %v1323_v42 = vmul.f32 %v1067_v55, %v3502_v9  ;;  %v1069_v1 = vadd.f32 1.0, %v2155_v58  ;;  %2176 = vtanh.f32 %v3580_v20  ;;  %v3652_v24 = vmul.f32 0.5, %v324_v36  ;;  %v328_v55 = vld [vmem:[%s2562_s30 + $0x5f8] sm:$0xff] }
  0xeb   : > { %v2159_v4 = vpop.eup %2158  ;;  %1578 = vst [vmem:[%s2639_s17 + $0x508] sm:$0xff] %v1322_v37  ;;  %v1324_v47 = vmul.f32 %v1068_v60, %v3508_v14  ;;  %v1070_v6 = vadd.f32 1.0, %v2157_v63  ;;  %2178 = vtanh.f32 %v3586_v28  ;;  %v3658_v31 = vmul.f32 0.5, %v325_v40  ;;  %v329_v60 = vld [vmem:[%s2562_s30 + $0x600] sm:$0xff] }
  0xec   : > { %v2161_v9 = vpop.eup %2160  ;;  %1579 = vst [vmem:[%s2639_s17 + $0x510] sm:$0xff] %v1323_v42  ;;  %v1325_v52 = vmul.f32 %v1069_v1, %v3514_v22  ;;  %v1071_v11 = vadd.f32 1.0, %v2159_v4  ;;  %2180 = vtanh.f32 %v3592_v34  ;;  %v3664_v37 = vmul.f32 0.5, %v326_v45  ;;  %v330_v1 = vld [vmem:[%s2562_s30 + $0x608] sm:$0xff] }
  0xed   : > { %v2163_v14 = vpop.eup %2162  ;;  %1580 = vst [vmem:[%s2639_s17 + $0x518] sm:$0xff] %v1324_v47  ;;  %v1326_v57 = vmul.f32 %v1070_v6, %v3520_v30  ;;  %v1072_v18 = vadd.f32 1.0, %v2161_v9  ;;  %2182 = vtanh.f32 %v3598_v39  ;;  %v3670_v42 = vmul.f32 0.5, %v327_v50  ;;  %v331_v6 = vld [vmem:[%s2562_s30 + $0x610] sm:$0xff] }
  0xee   : > { %v2165_v22 = vpop.eup %2164  ;;  %1581 = vst [vmem:[%s2639_s17 + $0x520] sm:$0xff] %v1325_v52  ;;  %v1327_v62 = vmul.f32 %v1071_v11, %v3526_v35  ;;  %v1073_v26 = vadd.f32 1.0, %v2163_v14  ;;  %2184 = vtanh.f32 %v3604_v44  ;;  %v3676_v47 = vmul.f32 0.5, %v328_v55  ;;  %v332_v11 = vld [vmem:[%s2562_s30 + $0x618] sm:$0xff] }
  0xef   : > { %v2167_v30 = vpop.eup %2166  ;;  %1582 = vst [vmem:[%s2639_s17 + $0x528] sm:$0xff] %v1326_v57  ;;  %v1328_v3 = vmul.f32 %v1072_v18, %v3532_v41  ;;  %v1074_v33 = vadd.f32 1.0, %v2165_v22  ;;  %2186 = vtanh.f32 %v3610_v49  ;;  %v3682_v52 = vmul.f32 0.5, %v329_v60  ;;  %v333_v18 = vld [vmem:[%s2562_s30 + $0x620] sm:$0xff] }
  0xf0   : > { %v2169_v35 = vpop.eup %2168  ;;  %1583 = vst [vmem:[%s2639_s17 + $0x530] sm:$0xff] %v1327_v62  ;;  %v1329_v8 = vmul.f32 %v1073_v26, %v3538_v46  ;;  %v1075_v38 = vadd.f32 1.0, %v2167_v30  ;;  %2188 = vtanh.f32 %v3616_v54  ;;  %v3688_v57 = vmul.f32 0.5, %v330_v1  ;;  %v334_v26 = vld [vmem:[%s2562_s30 + $0x628] sm:$0xff] }
  0xf1   : > { %v2171_v41 = vpop.eup %2170  ;;  %1584 = vst [vmem:[%s2639_s17 + $0x538] sm:$0xff] %v1328_v3  ;;  %v1330_v13 = vmul.f32 %v1074_v33, %v3544_v51  ;;  %v1076_v43 = vadd.f32 1.0, %v2169_v35  ;;  %2190 = vtanh.f32 %v3622_v59  ;;  %v3694_v62 = vmul.f32 0.5, %v331_v6  ;;  %v335_v33 = vld [vmem:[%s2562_s30 + $0x630] sm:$0xff] }
  0xf2   : > { %v2173_v46 = vpop.eup %2172  ;;  %1585 = vst [vmem:[%s2639_s17 + $0x540] sm:$0xff] %v1329_v8  ;;  %v1331_v15 = vmul.f32 %v1075_v38, %v3550_v56  ;;  %v1077_v48 = vadd.f32 1.0, %v2171_v41  ;;  %2192 = vtanh.f32 %v3628_v0  ;;  %v3700_v3 = vmul.f32 0.5, %v332_v11  ;;  %v336_v38 = vld [vmem:[%s2562_s30 + $0x638] sm:$0xff] }
  0xf3   : > { %v2175_v51 = vpop.eup %2174  ;;  %1586 = vst [vmem:[%s2639_s17 + $0x548] sm:$0xff] %v1330_v13  ;;  %v1332_v17 = vmul.f32 %v1076_v43, %v3556_v61  ;;  %v1078_v53 = vadd.f32 1.0, %v2173_v46  ;;  %2194 = vtanh.f32 %v3634_v5  ;;  %v3706_v8 = vmul.f32 0.5, %v333_v18  ;;  %v337_v43 = vld [vmem:[%s2562_s30 + $0x640] sm:$0xff] }
  0xf4   : > { %v2177_v56 = vpop.eup %2176  ;;  %1587 = vst [vmem:[%s2639_s17 + $0x550] sm:$0xff] %v1331_v15  ;;  %v1333_v19 = vmul.f32 %v1077_v48, %v3562_v2  ;;  %v1079_v58 = vadd.f32 1.0, %v2175_v51  ;;  %2196 = vtanh.f32 %v3640_v10  ;;  %v3712_v13 = vmul.f32 0.5, %v334_v26  ;;  %v338_v48 = vld [vmem:[%s2562_s30 + $0x648] sm:$0xff] }
  0xf5   : > { %v2179_v61 = vpop.eup %2178  ;;  %1588 = vst [vmem:[%s2639_s17 + $0x558] sm:$0xff] %v1332_v17  ;;  %v1334_v21 = vmul.f32 %v1078_v53, %v3568_v7  ;;  %v1080_v63 = vadd.f32 1.0, %v2177_v56  ;;  %2198 = vtanh.f32 %v3646_v16  ;;  %v3718_v15 = vmul.f32 0.5, %v335_v33  ;;  %v339_v53 = vld [vmem:[%s2562_s30 + $0x650] sm:$0xff] }
  0xf6   : > { %v2181_v2 = vpop.eup %2180  ;;  %1589 = vst [vmem:[%s2639_s17 + $0x560] sm:$0xff] %v1333_v19  ;;  %v1335_v23 = vmul.f32 %v1079_v58, %v3574_v12  ;;  %v1081_v4 = vadd.f32 1.0, %v2179_v61  ;;  %2200 = vtanh.f32 %v3652_v24  ;;  %v3724_v17 = vmul.f32 0.5, %v336_v38  ;;  %v340_v58 = vld [vmem:[%s2562_s30 + $0x658] sm:$0xff] }
  0xf7   : > { %v2183_v7 = vpop.eup %2182  ;;  %1590 = vst [vmem:[%s2639_s17 + $0x568] sm:$0xff] %v1334_v21  ;;  %v1336_v25 = vmul.f32 %v1080_v63, %v3580_v20  ;;  %v1082_v9 = vadd.f32 1.0, %v2181_v2  ;;  %2202 = vtanh.f32 %v3658_v31  ;;  %v3730_v19 = vmul.f32 0.5, %v337_v43  ;;  %v341_v63 = vld [vmem:[%s2562_s30 + $0x660] sm:$0xff] }
  0xf8   : > { %v2185_v12 = vpop.eup %2184  ;;  %1591 = vst [vmem:[%s2639_s17 + $0x570] sm:$0xff] %v1335_v23  ;;  %v1337_v27 = vmul.f32 %v1081_v4, %v3586_v28  ;;  %v1083_v14 = vadd.f32 1.0, %v2183_v7  ;;  %2204 = vtanh.f32 %v3664_v37  ;;  %v3736_v21 = vmul.f32 0.5, %v338_v48  ;;  %v342_v4 = vld [vmem:[%s2562_s30 + $0x668] sm:$0xff] }
  0xf9   : > { %v2187_v20 = vpop.eup %2186  ;;  %1592 = vst [vmem:[%s2639_s17 + $0x578] sm:$0xff] %v1336_v25  ;;  %v1338_v29 = vmul.f32 %v1082_v9, %v3592_v34  ;;  %v1084_v22 = vadd.f32 1.0, %v2185_v12  ;;  %2206 = vtanh.f32 %v3670_v42  ;;  %v3742_v23 = vmul.f32 0.5, %v339_v53  ;;  %v343_v9 = vld [vmem:[%s2562_s30 + $0x670] sm:$0xff] }
  0xfa   : > { %v2189_v28 = vpop.eup %2188  ;;  %1593 = vst [vmem:[%s2639_s17 + $0x580] sm:$0xff] %v1337_v27  ;;  %v1339_v32 = vmul.f32 %v1083_v14, %v3598_v39  ;;  %v1085_v30 = vadd.f32 1.0, %v2187_v20  ;;  %2208 = vtanh.f32 %v3676_v47  ;;  %v3748_v25 = vmul.f32 0.5, %v340_v58  ;;  %v344_v14 = vld [vmem:[%s2562_s30 + $0x678] sm:$0xff] }
  0xfb   : > { %v2191_v34 = vpop.eup %2190  ;;  %1594 = vst [vmem:[%s2639_s17 + $0x588] sm:$0xff] %v1338_v29  ;;  %v1340_v36 = vmul.f32 %v1084_v22, %v3604_v44  ;;  %v1086_v35 = vadd.f32 1.0, %v2189_v28  ;;  %2210 = vtanh.f32 %v3682_v52  ;;  %v3754_v27 = vmul.f32 0.5, %v341_v63  ;;  %v345_v22 = vld [vmem:[%s2562_s30 + $0x680] sm:$0xff] }
  0xfc   : > { %v2193_v39 = vpop.eup %2192  ;;  %1595 = vst [vmem:[%s2639_s17 + $0x590] sm:$0xff] %v1339_v32  ;;  %v1341_v40 = vmul.f32 %v1085_v30, %v3610_v49  ;;  %v1087_v41 = vadd.f32 1.0, %v2191_v34  ;;  %2212 = vtanh.f32 %v3688_v57  ;;  %v3760_v29 = vmul.f32 0.5, %v342_v4  ;;  %v346_v30 = vld [vmem:[%s2562_s30 + $0x688] sm:$0xff] }
  0xfd   : > { %v2195_v44 = vpop.eup %2194  ;;  %1596 = vst [vmem:[%s2639_s17 + $0x598] sm:$0xff] %v1340_v36  ;;  %v1342_v45 = vmul.f32 %v1086_v35, %v3616_v54  ;;  %v1088_v46 = vadd.f32 1.0, %v2193_v39  ;;  %2214 = vtanh.f32 %v3694_v62  ;;  %v3766_v32 = vmul.f32 0.5, %v343_v9  ;;  %v347_v35 = vld [vmem:[%s2562_s30 + $0x690] sm:$0xff] }
  0xfe   : > { %v2197_v49 = vpop.eup %2196  ;;  %1597 = vst [vmem:[%s2639_s17 + $0x5a0] sm:$0xff] %v1341_v40  ;;  %v1343_v50 = vmul.f32 %v1087_v41, %v3622_v59  ;;  %v1089_v51 = vadd.f32 1.0, %v2195_v44  ;;  %2216 = vtanh.f32 %v3700_v3  ;;  %v3772_v36 = vmul.f32 0.5, %v344_v14  ;;  %v348_v41 = vld [vmem:[%s2562_s30 + $0x698] sm:$0xff] }
  0xff   : > { %v2199_v54 = vpop.eup %2198  ;;  %1598 = vst [vmem:[%s2639_s17 + $0x5a8] sm:$0xff] %v1342_v45  ;;  %v1344_v55 = vmul.f32 %v1088_v46, %v3628_v0  ;;  %v1090_v56 = vadd.f32 1.0, %v2197_v49  ;;  %2218 = vtanh.f32 %v3706_v8  ;;  %v3778_v40 = vmul.f32 0.5, %v345_v22  ;;  %v349_v46 = vld [vmem:[%s2562_s30 + $0x6a0] sm:$0xff] }
 0x100   : > { %v2201_v59 = vpop.eup %2200  ;;  %1599 = vst [vmem:[%s2639_s17 + $0x5b0] sm:$0xff] %v1343_v50  ;;  %v1345_v60 = vmul.f32 %v1089_v51, %v3634_v5  ;;  %v1091_v61 = vadd.f32 1.0, %v2199_v54  ;;  %2220 = vtanh.f32 %v3712_v13  ;;  %v3784_v45 = vmul.f32 0.5, %v346_v30  ;;  %v350_v51 = vld [vmem:[%s2562_s30 + $0x6a8] sm:$0xff] }
 0x101   : > { %v2203_v0 = vpop.eup %2202  ;;  %1600 = vst [vmem:[%s2639_s17 + $0x5b8] sm:$0xff] %v1344_v55  ;;  %v1346_v1 = vmul.f32 %v1090_v56, %v3640_v10  ;;  %v1092_v2 = vadd.f32 1.0, %v2201_v59  ;;  %2222 = vtanh.f32 %v3718_v15  ;;  %v3790_v50 = vmul.f32 0.5, %v347_v35  ;;  %v351_v56 = vld [vmem:[%s2562_s30 + $0x6b0] sm:$0xff] }
 0x102   : > { %v2205_v5 = vpop.eup %2204  ;;  %1601 = vst [vmem:[%s2639_s17 + $0x5c0] sm:$0xff] %v1345_v60  ;;  %v1347_v6 = vmul.f32 %v1091_v61, %v3646_v16  ;;  %v1093_v7 = vadd.f32 1.0, %v2203_v0  ;;  %2224 = vtanh.f32 %v3724_v17  ;;  %v3796_v55 = vmul.f32 0.5, %v348_v41  ;;  %v352_v61 = vld [vmem:[%s2562_s30 + $0x6b8] sm:$0xff] }
 0x103   : > { %v2207_v10 = vpop.eup %2206  ;;  %1602 = vst [vmem:[%s2639_s17 + $0x5c8] sm:$0xff] %v1346_v1  ;;  %v1348_v11 = vmul.f32 %v1092_v2, %v3652_v24  ;;  %v1094_v12 = vadd.f32 1.0, %v2205_v5  ;;  %2226 = vtanh.f32 %v3730_v19  ;;  %v3802_v60 = vmul.f32 0.5, %v349_v46  ;;  %v353_v2 = vld [vmem:[%s2562_s30 + $0x6c0] sm:$0xff] }
 0x104   : > { %v2209_v16 = vpop.eup %2208  ;;  %1603 = vst [vmem:[%s2639_s17 + $0x5d0] sm:$0xff] %v1347_v6  ;;  %v1349_v18 = vmul.f32 %v1093_v7, %v3658_v31  ;;  %v1095_v20 = vadd.f32 1.0, %v2207_v10  ;;  %2228 = vtanh.f32 %v3736_v21  ;;  %v3808_v1 = vmul.f32 0.5, %v350_v51  ;;  %v354_v7 = vld [vmem:[%s2562_s30 + $0x6c8] sm:$0xff] }
 0x105   : > { %v2211_v24 = vpop.eup %2210  ;;  %1604 = vst [vmem:[%s2639_s17 + $0x5d8] sm:$0xff] %v1348_v11  ;;  %v1350_v26 = vmul.f32 %v1094_v12, %v3664_v37  ;;  %v1096_v28 = vadd.f32 1.0, %v2209_v16  ;;  %2230 = vtanh.f32 %v3742_v23  ;;  %v3814_v6 = vmul.f32 0.5, %v351_v56  ;;  %v355_v12 = vld [vmem:[%s2562_s30 + $0x6d0] sm:$0xff] }
 0x106   : > { %v2213_v31 = vpop.eup %2212  ;;  %1605 = vst [vmem:[%s2639_s17 + $0x5e0] sm:$0xff] %v1349_v18  ;;  %v1351_v33 = vmul.f32 %v1095_v20, %v3670_v42  ;;  %v1097_v34 = vadd.f32 1.0, %v2211_v24  ;;  %2232 = vtanh.f32 %v3748_v25  ;;  %v3820_v11 = vmul.f32 0.5, %v352_v61  ;;  %v356_v20 = vld [vmem:[%s2562_s30 + $0x6d8] sm:$0xff] }
 0x107   : > { %v2215_v37 = vpop.eup %2214  ;;  %1606 = vst [vmem:[%s2639_s17 + $0x5e8] sm:$0xff] %v1350_v26  ;;  %v1352_v38 = vmul.f32 %v1096_v28, %v3676_v47  ;;  %v1098_v39 = vadd.f32 1.0, %v2213_v31  ;;  %2234 = vtanh.f32 %v3754_v27  ;;  %v3826_v18 = vmul.f32 0.5, %v353_v2  ;;  %v357_v28 = vld [vmem:[%s2562_s30 + $0x6e0] sm:$0xff] }
 0x108   : > { %v2217_v42 = vpop.eup %2216  ;;  %1607 = vst [vmem:[%s2639_s17 + $0x5f0] sm:$0xff] %v1351_v33  ;;  %v1353_v43 = vmul.f32 %v1097_v34, %v3682_v52  ;;  %v1099_v44 = vadd.f32 1.0, %v2215_v37  ;;  %2236 = vtanh.f32 %v3760_v29  ;;  %v3832_v26 = vmul.f32 0.5, %v354_v7  ;;  %v358_v34 = vld [vmem:[%s2562_s30 + $0x6e8] sm:$0xff] }
 0x109   : > { %v2219_v47 = vpop.eup %2218  ;;  %1608 = vst [vmem:[%s2639_s17 + $0x5f8] sm:$0xff] %v1352_v38  ;;  %v1354_v48 = vmul.f32 %v1098_v39, %v3688_v57  ;;  %v1100_v49 = vadd.f32 1.0, %v2217_v42  ;;  %2238 = vtanh.f32 %v3766_v32  ;;  %v3838_v33 = vmul.f32 0.5, %v355_v12  ;;  %v359_v39 = vld [vmem:[%s2562_s30 + $0x6f0] sm:$0xff] }
 0x10a   : > { %v2221_v52 = vpop.eup %2220  ;;  %1609 = vst [vmem:[%s2639_s17 + $0x600] sm:$0xff] %v1353_v43  ;;  %v1355_v53 = vmul.f32 %v1099_v44, %v3694_v62  ;;  %v1101_v54 = vadd.f32 1.0, %v2219_v47  ;;  %2240 = vtanh.f32 %v3772_v36  ;;  %v3844_v38 = vmul.f32 0.5, %v356_v20  ;;  %v360_v44 = vld [vmem:[%s2562_s30 + $0x6f8] sm:$0xff] }
 0x10b   : > { %v2223_v57 = vpop.eup %2222  ;;  %1610 = vst [vmem:[%s2639_s17 + $0x608] sm:$0xff] %v1354_v48  ;;  %v1356_v58 = vmul.f32 %v1100_v49, %v3700_v3  ;;  %v1102_v59 = vadd.f32 1.0, %v2221_v52  ;;  %2242 = vtanh.f32 %v3778_v40  ;;  %v3850_v43 = vmul.f32 0.5, %v357_v28  ;;  %v361_v49 = vld [vmem:[%s2562_s30 + $0x700] sm:$0xff] }
 0x10c   : > { %v2225_v62 = vpop.eup %2224  ;;  %1611 = vst [vmem:[%s2639_s17 + $0x610] sm:$0xff] %v1355_v53  ;;  %v1357_v63 = vmul.f32 %v1101_v54, %v3706_v8  ;;  %v1103_v0 = vadd.f32 1.0, %v2223_v57  ;;  %2244 = vtanh.f32 %v3784_v45  ;;  %v3856_v48 = vmul.f32 0.5, %v358_v34  ;;  %v362_v54 = vld [vmem:[%s2562_s30 + $0x708] sm:$0xff] }
 0x10d   : > { %v2227_v3 = vpop.eup %2226  ;;  %1612 = vst [vmem:[%s2639_s17 + $0x618] sm:$0xff] %v1356_v58  ;;  %v1358_v4 = vmul.f32 %v1102_v59, %v3712_v13  ;;  %v1104_v5 = vadd.f32 1.0, %v2225_v62  ;;  %2246 = vtanh.f32 %v3790_v50  ;;  %v3862_v53 = vmul.f32 0.5, %v359_v39  ;;  %v363_v59 = vld [vmem:[%s2562_s30 + $0x710] sm:$0xff] }
 0x10e   : > { %v2229_v8 = vpop.eup %2228  ;;  %1613 = vst [vmem:[%s2639_s17 + $0x620] sm:$0xff] %v1357_v63  ;;  %v1359_v9 = vmul.f32 %v1103_v0, %v3718_v15  ;;  %v1105_v10 = vadd.f32 1.0, %v2227_v3  ;;  %2248 = vtanh.f32 %v3796_v55  ;;  %v3868_v58 = vmul.f32 0.5, %v360_v44  ;;  %v364_v0 = vld [vmem:[%s2562_s30 + $0x718] sm:$0xff] }
 0x10f   : > { %v2231_v13 = vpop.eup %2230  ;;  %1614 = vst [vmem:[%s2639_s17 + $0x628] sm:$0xff] %v1358_v4  ;;  %v1360_v14 = vmul.f32 %v1104_v5, %v3724_v17  ;;  %v1106_v16 = vadd.f32 1.0, %v2229_v8  ;;  %2250 = vtanh.f32 %v3802_v60  ;;  %v3874_v63 = vmul.f32 0.5, %v361_v49  ;;  %v365_v5 = vld [vmem:[%s2562_s30 + $0x720] sm:$0xff] }
 0x110   : > { %v2233_v15 = vpop.eup %2232  ;;  %1615 = vst [vmem:[%s2639_s17 + $0x630] sm:$0xff] %v1359_v9  ;;  %v1361_v22 = vmul.f32 %v1105_v10, %v3730_v19  ;;  %v1107_v24 = vadd.f32 1.0, %v2231_v13  ;;  %2252 = vtanh.f32 %v3808_v1  ;;  %v3880_v4 = vmul.f32 0.5, %v362_v54  ;;  %v366_v10 = vld [vmem:[%s2562_s30 + $0x728] sm:$0xff] }
 0x111   : > { %v2235_v17 = vpop.eup %2234  ;;  %1616 = vst [vmem:[%s2639_s17 + $0x638] sm:$0xff] %v1360_v14  ;;  %v1362_v30 = vmul.f32 %v1106_v16, %v3736_v21  ;;  %v1108_v31 = vadd.f32 1.0, %v2233_v15  ;;  %2254 = vtanh.f32 %v3814_v6  ;;  %v3886_v9 = vmul.f32 0.5, %v363_v59  ;;  %v367_v16 = vld [vmem:[%s2562_s30 + $0x730] sm:$0xff] }
 0x112   : > { %v2237_v19 = vpop.eup %2236  ;;  %1617 = vst [vmem:[%s2639_s17 + $0x640] sm:$0xff] %v1361_v22  ;;  %v1363_v35 = vmul.f32 %v1107_v24, %v3742_v23  ;;  %v1109_v37 = vadd.f32 1.0, %v2235_v17  ;;  %2256 = vtanh.f32 %v3820_v11  ;;  %v3892_v14 = vmul.f32 0.5, %v364_v0  ;;  %v368_v24 = vld [vmem:[%s2562_s30 + $0x738] sm:$0xff] }
 0x113   : > { %v2239_v21 = vpop.eup %2238  ;;  %1618 = vst [vmem:[%s2639_s17 + $0x648] sm:$0xff] %v1362_v30  ;;  %v1364_v41 = vmul.f32 %v1108_v31, %v3748_v25  ;;  %v1110_v42 = vadd.f32 1.0, %v2237_v19  ;;  %2258 = vtanh.f32 %v3826_v18  ;;  %v3898_v22 = vmul.f32 0.5, %v365_v5  ;;  %v369_v31 = vld [vmem:[%s2562_s30 + $0x740] sm:$0xff] }
 0x114   : > { %v2241_v23 = vpop.eup %2240  ;;  %1619 = vst [vmem:[%s2639_s17 + $0x650] sm:$0xff] %v1363_v35  ;;  %v1365_v46 = vmul.f32 %v1109_v37, %v3754_v27  ;;  %v1111_v47 = vadd.f32 1.0, %v2239_v21  ;;  %2260 = vtanh.f32 %v3832_v26  ;;  %v3904_v30 = vmul.f32 0.5, %v366_v10  ;;  %v370_v37 = vld [vmem:[%s2562_s30 + $0x748] sm:$0xff] }
 0x115   : > { %v2243_v25 = vpop.eup %2242  ;;  %1620 = vst [vmem:[%s2639_s17 + $0x658] sm:$0xff] %v1364_v41  ;;  %v1366_v51 = vmul.f32 %v1110_v42, %v3760_v29  ;;  %v1112_v52 = vadd.f32 1.0, %v2241_v23  ;;  %2262 = vtanh.f32 %v3838_v33  ;;  %v3910_v35 = vmul.f32 0.5, %v367_v16  ;;  %v371_v42 = vld [vmem:[%s2562_s30 + $0x750] sm:$0xff] }
 0x116   : > { %v2245_v27 = vpop.eup %2244  ;;  %1621 = vst [vmem:[%s2639_s17 + $0x660] sm:$0xff] %v1365_v46  ;;  %v1367_v56 = vmul.f32 %v1111_v47, %v3766_v32  ;;  %v1113_v57 = vadd.f32 1.0, %v2243_v25  ;;  %2264 = vtanh.f32 %v3844_v38  ;;  %v3916_v41 = vmul.f32 0.5, %v368_v24  ;;  %v372_v47 = vld [vmem:[%s2562_s30 + $0x758] sm:$0xff] }
 0x117   : > { %v2247_v29 = vpop.eup %2246  ;;  %1622 = vst [vmem:[%s2639_s17 + $0x668] sm:$0xff] %v1366_v51  ;;  %v1368_v61 = vmul.f32 %v1112_v52, %v3772_v36  ;;  %v1114_v62 = vadd.f32 1.0, %v2245_v27  ;;  %2266 = vtanh.f32 %v3850_v43  ;;  %v3922_v46 = vmul.f32 0.5, %v369_v31  ;;  %v373_v52 = vld [vmem:[%s2562_s30 + $0x760] sm:$0xff] }
 0x118   : > { %v2249_v32 = vpop.eup %2248  ;;  %1623 = vst [vmem:[%s2639_s17 + $0x670] sm:$0xff] %v1367_v56  ;;  %v1369_v2 = vmul.f32 %v1113_v57, %v3778_v40  ;;  %v1115_v3 = vadd.f32 1.0, %v2247_v29  ;;  %2268 = vtanh.f32 %v3856_v48  ;;  %v3928_v51 = vmul.f32 0.5, %v370_v37  ;;  %v374_v57 = vld [vmem:[%s2562_s30 + $0x768] sm:$0xff] }
 0x119   : > { %v2251_v36 = vpop.eup %2250  ;;  %1624 = vst [vmem:[%s2639_s17 + $0x678] sm:$0xff] %v1368_v61  ;;  %v1370_v7 = vmul.f32 %v1114_v62, %v3784_v45  ;;  %v1116_v8 = vadd.f32 1.0, %v2249_v32  ;;  %2270 = vtanh.f32 %v3862_v53  ;;  %v3934_v56 = vmul.f32 0.5, %v371_v42  ;;  %v375_v62 = vld [vmem:[%s2562_s30 + $0x770] sm:$0xff] }
 0x11a   : > { %v2253_v40 = vpop.eup %2252  ;;  %1625 = vst [vmem:[%s2639_s17 + $0x680] sm:$0xff] %v1369_v2  ;;  %v1371_v12 = vmul.f32 %v1115_v3, %v3790_v50  ;;  %v1117_v13 = vadd.f32 1.0, %v2251_v36  ;;  %2272 = vtanh.f32 %v3868_v58  ;;  %v3940_v61 = vmul.f32 0.5, %v372_v47  ;;  %v376_v3 = vld [vmem:[%s2562_s30 + $0x778] sm:$0xff] }
 0x11b   : > { %v2255_v45 = vpop.eup %2254  ;;  %1626 = vst [vmem:[%s2639_s17 + $0x688] sm:$0xff] %v1370_v7  ;;  %v1372_v20 = vmul.f32 %v1116_v8, %v3796_v55  ;;  %v1118_v15 = vadd.f32 1.0, %v2253_v40  ;;  %2274 = vtanh.f32 %v3874_v63  ;;  %v3946_v2 = vmul.f32 0.5, %v373_v52  ;;  %v377_v8 = vld [vmem:[%s2562_s30 + $0x780] sm:$0xff] }
 0x11c   : > { %v2257_v50 = vpop.eup %2256  ;;  %1627 = vst [vmem:[%s2639_s17 + $0x690] sm:$0xff] %v1371_v12  ;;  %v1373_v28 = vmul.f32 %v1117_v13, %v3802_v60  ;;  %v1119_v17 = vadd.f32 1.0, %v2255_v45  ;;  %2276 = vtanh.f32 %v3880_v4  ;;  %v3952_v7 = vmul.f32 0.5, %v374_v57  ;;  %v378_v13 = vld [vmem:[%s2562_s30 + $0x788] sm:$0xff] }
 0x11d   : > { %v2259_v55 = vpop.eup %2258  ;;  %1628 = vst [vmem:[%s2639_s17 + $0x698] sm:$0xff] %v1372_v20  ;;  %v1374_v34 = vmul.f32 %v1118_v15, %v3808_v1  ;;  %v1120_v19 = vadd.f32 1.0, %v2257_v50  ;;  %2278 = vtanh.f32 %v3886_v9  ;;  %v3958_v12 = vmul.f32 0.5, %v375_v62  ;;  %v379_v15 = vld [vmem:[%s2562_s30 + $0x790] sm:$0xff] }
 0x11e   : > { %v2261_v60 = vpop.eup %2260  ;;  %1629 = vst [vmem:[%s2639_s17 + $0x6a0] sm:$0xff] %v1373_v28  ;;  %v1375_v39 = vmul.f32 %v1119_v17, %v3814_v6  ;;  %v1121_v21 = vadd.f32 1.0, %v2259_v55  ;;  %2280 = vtanh.f32 %v3892_v14  ;;  %v3964_v20 = vmul.f32 0.5, %v376_v3  ;;  %v380_v17 = vld [vmem:[%s2562_s30 + $0x798] sm:$0xff] }
 0x11f   : > { %v2263_v1 = vpop.eup %2262  ;;  %1630 = vst [vmem:[%s2639_s17 + $0x6a8] sm:$0xff] %v1374_v34  ;;  %v1376_v44 = vmul.f32 %v1120_v19, %v3820_v11  ;;  %v1122_v23 = vadd.f32 1.0, %v2261_v60  ;;  %2282 = vtanh.f32 %v3898_v22  ;;  %v3970_v28 = vmul.f32 0.5, %v377_v8  ;;  %v381_v19 = vld [vmem:[%s2562_s30 + $0x7a0] sm:$0xff] }
 0x120   : > { %v2265_v6 = vpop.eup %2264  ;;  %1631 = vst [vmem:[%s2639_s17 + $0x6b0] sm:$0xff] %v1375_v39  ;;  %v1377_v49 = vmul.f32 %v1121_v21, %v3826_v18  ;;  %v1123_v25 = vadd.f32 1.0, %v2263_v1  ;;  %2284 = vtanh.f32 %v3904_v30  ;;  %v3976_v34 = vmul.f32 0.5, %v378_v13  ;;  %v382_v21 = vld [vmem:[%s2562_s30 + $0x7a8] sm:$0xff] }
 0x121   : > { %v2267_v11 = vpop.eup %2266  ;;  %1632 = vst [vmem:[%s2639_s17 + $0x6b8] sm:$0xff] %v1376_v44  ;;  %v1378_v54 = vmul.f32 %v1122_v23, %v3832_v26  ;;  %v1124_v27 = vadd.f32 1.0, %v2265_v6  ;;  %2286 = vtanh.f32 %v3910_v35  ;;  %v3982_v39 = vmul.f32 0.5, %v379_v15  ;;  %v383_v23 = vld [vmem:[%s2562_s30 + $0x7b0] sm:$0xff] }
 0x122   : > { %v2269_v18 = vpop.eup %2268  ;;  %1633 = vst [vmem:[%s2639_s17 + $0x6c0] sm:$0xff] %v1377_v49  ;;  %v1379_v59 = vmul.f32 %v1123_v25, %v3838_v33  ;;  %v1125_v29 = vadd.f32 1.0, %v2267_v11  ;;  %2288 = vtanh.f32 %v3916_v41  ;;  %v3988_v44 = vmul.f32 0.5, %v380_v17  ;;  %v384_v25 = vld [vmem:[%s2562_s30 + $0x7b8] sm:$0xff] }
 0x123   : > { %v2271_v26 = vpop.eup %2270  ;;  %1634 = vst [vmem:[%s2639_s17 + $0x6c8] sm:$0xff] %v1378_v54  ;;  %v1380_v0 = vmul.f32 %v1124_v27, %v3844_v38  ;;  %v1126_v32 = vadd.f32 1.0, %v2269_v18  ;;  %2290 = vtanh.f32 %v3922_v46  ;;  %v3994_v49 = vmul.f32 0.5, %v381_v19  ;;  %v385_v27 = vld [vmem:[%s2562_s30 + $0x7c0] sm:$0xff] }
 0x124   : > { %v2273_v33 = vpop.eup %2272  ;;  %1635 = vst [vmem:[%s2639_s17 + $0x6d0] sm:$0xff] %v1379_v59  ;;  %v1381_v5 = vmul.f32 %v1125_v29, %v3850_v43  ;;  %v1127_v36 = vadd.f32 1.0, %v2271_v26  ;;  %2292 = vtanh.f32 %v3928_v51  ;;  %v4000_v54 = vmul.f32 0.5, %v382_v21  ;;  %v386_v29 = vld [vmem:[%s2562_s30 + $0x7c8] sm:$0xff] }
 0x125   : > { %v2275_v38 = vpop.eup %2274  ;;  %1636 = vst [vmem:[%s2639_s17 + $0x6d8] sm:$0xff] %v1380_v0  ;;  %v1382_v10 = vmul.f32 %v1126_v32, %v3856_v48  ;;  %v1128_v40 = vadd.f32 1.0, %v2273_v33  ;;  %2294 = vtanh.f32 %v3934_v56  ;;  %v4006_v59 = vmul.f32 0.5, %v383_v23  ;;  %v387_v32 = vld [vmem:[%s2562_s30 + $0x7d0] sm:$0xff] }
 0x126   : > { %v2277_v43 = vpop.eup %2276  ;;  %1637 = vst [vmem:[%s2639_s17 + $0x6e0] sm:$0xff] %v1381_v5  ;;  %v1383_v16 = vmul.f32 %v1127_v36, %v3862_v53  ;;  %v1129_v45 = vadd.f32 1.0, %v2275_v38  ;;  %2296 = vtanh.f32 %v3940_v61  ;;  %v4012_v0 = vmul.f32 0.5, %v384_v25  ;;  %v388_v36 = vld [vmem:[%s2562_s30 + $0x7d8] sm:$0xff] }
 0x127   : > { %v2279_v48 = vpop.eup %2278  ;;  %1638 = vst [vmem:[%s2639_s17 + $0x6e8] sm:$0xff] %v1382_v10  ;;  %v1384_v24 = vmul.f32 %v1128_v40, %v3868_v58  ;;  %v1130_v50 = vadd.f32 1.0, %v2277_v43  ;;  %2298 = vtanh.f32 %v3946_v2  ;;  %v4018_v5 = vmul.f32 0.5, %v385_v27  ;;  %v389_v40 = vld [vmem:[%s2562_s30 + $0x7e0] sm:$0xff] }
 0x128   : > { %v2281_v53 = vpop.eup %2280  ;;  %1639 = vst [vmem:[%s2639_s17 + $0x6f0] sm:$0xff] %v1383_v16  ;;  %v1385_v31 = vmul.f32 %v1129_v45, %v3874_v63  ;;  %v1131_v55 = vadd.f32 1.0, %v2279_v48  ;;  %2300 = vtanh.f32 %v3952_v7  ;;  %v4024_v10 = vmul.f32 0.5, %v386_v29  ;;  %v390_v45 = vld [vmem:[%s2562_s30 + $0x7e8] sm:$0xff] }
 0x129   : > { %v2283_v58 = vpop.eup %2282  ;;  %1640 = vst [vmem:[%s2639_s17 + $0x6f8] sm:$0xff] %v1384_v24  ;;  %v1386_v37 = vmul.f32 %v1130_v50, %v3880_v4  ;;  %v1132_v60 = vadd.f32 1.0, %v2281_v53  ;;  %2302 = vtanh.f32 %v3958_v12  ;;  %v4030_v16 = vmul.f32 0.5, %v387_v32  ;;  %v391_v50 = vld [vmem:[%s2562_s30 + $0x7f0] sm:$0xff] }
 0x12a   : > { %v2285_v63 = vpop.eup %2284  ;;  %1641 = vst [vmem:[%s2639_s17 + $0x700] sm:$0xff] %v1385_v31  ;;  %v1387_v42 = vmul.f32 %v1131_v55, %v3886_v9  ;;  %v1133_v1 = vadd.f32 1.0, %v2283_v58  ;;  %2304 = vtanh.f32 %v3964_v20  ;;  %v4036_v24 = vmul.f32 0.5, %v388_v36  ;;  %v392_v55 = vld [vmem:[%s2562_s30 + $0x7f8] sm:$0xff] }
 0x12b   : > { %v2287_v4 = vpop.eup %2286  ;;  %1642 = vst [vmem:[%s2639_s17 + $0x708] sm:$0xff] %v1386_v37  ;;  %v1388_v47 = vmul.f32 %v1132_v60, %v3892_v14  ;;  %v1134_v6 = vadd.f32 1.0, %v2285_v63  ;;  %2306 = vtanh.f32 %v3970_v28  ;;  %v4042_v31 = vmul.f32 0.5, %v389_v40 }
 0x12c   : > { %v2289_v9 = vpop.eup %2288  ;;  %1643 = vst [vmem:[%s2639_s17 + $0x710] sm:$0xff] %v1387_v42  ;;  %v1389_v52 = vmul.f32 %v1133_v1, %v3898_v22  ;;  %v1135_v11 = vadd.f32 1.0, %v2287_v4  ;;  %2308 = vtanh.f32 %v3976_v34  ;;  %v4048_v37 = vmul.f32 0.5, %v390_v45 }
 0x12d   : > { %v2291_v14 = vpop.eup %2290  ;;  %1644 = vst [vmem:[%s2639_s17 + $0x718] sm:$0xff] %v1388_v47  ;;  %v1390_v57 = vmul.f32 %v1134_v6, %v3904_v30  ;;  %v1136_v18 = vadd.f32 1.0, %v2289_v9  ;;  %2310 = vtanh.f32 %v3982_v39  ;;  %v4053_v63 = vmul.f32 0.5, %v391_v50 }
 0x12e   : > { %v2293_v22 = vpop.eup %2292  ;;  %1645 = vst [vmem:[%s2639_s17 + $0x720] sm:$0xff] %v1389_v52  ;;  %v1391_v62 = vmul.f32 %v1135_v11, %v3910_v35  ;;  %v1137_v26 = vadd.f32 1.0, %v2291_v14  ;;  %2312 = vtanh.f32 %v3988_v44  ;;  %v4058_v23 = vmul.f32 0.5, %v392_v55 }
 0x12f   : > { %v2295_v30 = vpop.eup %2294  ;;  %1646 = vst [vmem:[%s2639_s17 + $0x728] sm:$0xff] %v1390_v57  ;;  %v1392_v3 = vmul.f32 %v1136_v18, %v3916_v41  ;;  %v1138_v33 = vadd.f32 1.0, %v2293_v22  ;;  %2314 = vtanh.f32 %v3994_v49 }
 0x130   : > { %v2297_v35 = vpop.eup %2296  ;;  %1647 = vst [vmem:[%s2639_s17 + $0x730] sm:$0xff] %v1391_v62  ;;  %v1393_v8 = vmul.f32 %v1137_v26, %v3922_v46  ;;  %v1139_v38 = vadd.f32 1.0, %v2295_v30  ;;  %2316 = vtanh.f32 %v4000_v54 }
 0x131   : > { %v2299_v41 = vpop.eup %2298  ;;  %1648 = vst [vmem:[%s2639_s17 + $0x738] sm:$0xff] %v1392_v3  ;;  %v1394_v13 = vmul.f32 %v1138_v33, %v3928_v51  ;;  %v1140_v43 = vadd.f32 1.0, %v2297_v35  ;;  %2318 = vtanh.f32 %v4006_v59 }
 0x132   : > { %v2301_v46 = vpop.eup %2300  ;;  %1649 = vst [vmem:[%s2639_s17 + $0x740] sm:$0xff] %v1393_v8  ;;  %v1395_v15 = vmul.f32 %v1139_v38, %v3934_v56  ;;  %v1141_v48 = vadd.f32 1.0, %v2299_v41  ;;  %2320 = vtanh.f32 %v4012_v0 }
 0x133   : > { %v2303_v51 = vpop.eup %2302  ;;  %1650 = vst [vmem:[%s2639_s17 + $0x748] sm:$0xff] %v1394_v13  ;;  %v1396_v17 = vmul.f32 %v1140_v43, %v3940_v61  ;;  %v1142_v53 = vadd.f32 1.0, %v2301_v46  ;;  %2322 = vtanh.f32 %v4018_v5 }
 0x134   : > { %v2305_v19 = vpop.eup %2304  ;;  %1651 = vst [vmem:[%s2639_s17 + $0x750] sm:$0xff] %v1395_v15  ;;  %v1397_v56 = vmul.f32 %v1141_v48, %v3946_v2  ;;  %v1143_v58 = vadd.f32 1.0, %v2303_v51  ;;  %2324 = vtanh.f32 %v4024_v10 }
 0x135   : > { %v2307_v60 = vpop.eup %2306  ;;  %1652 = vst [vmem:[%s2639_s17 + $0x758] sm:$0xff] %v1396_v17  ;;  %v1398_v61 = vmul.f32 %v1142_v53, %v3952_v7  ;;  %v1144_v21 = vadd.f32 1.0, %v2305_v19  ;;  %2326 = vtanh.f32 %v4030_v16 }
 0x136   : > { %v2309_v42 = vpop.eup %2308  ;;  %1653 = vst [vmem:[%s2639_s17 + $0x760] sm:$0xff] %v1397_v56  ;;  %v1399_v2 = vmul.f32 %v1143_v58, %v3958_v12  ;;  %v1145_v1 = vadd.f32 1.0, %v2307_v60  ;;  %2328 = vtanh.f32 %v4036_v24 }
 0x137   : > { %v2311_v4 = vpop.eup %2310  ;;  %1654 = vst [vmem:[%s2639_s17 + $0x768] sm:$0xff] %v1398_v61  ;;  %v1400_v7 = vmul.f32 %v1144_v21, %v3964_v20  ;;  %v1146_v47 = vadd.f32 1.0, %v2309_v42  ;;  %2330 = vtanh.f32 %v4042_v31 }
 0x138   : > { %v2313_v6 = vpop.eup %2312  ;;  %1655 = vst [vmem:[%s2639_s17 + $0x770] sm:$0xff] %v1399_v2  ;;  %v1401_v25 = vmul.f32 %v1145_v1, %v3970_v28  ;;  %v1147_v9 = vadd.f32 1.0, %v2311_v4  ;;  %2332 = vtanh.f32 %v4048_v37 }
 0x139   : > { %v2315_v12 = vpop.eup %2314  ;;  %1656 = vst [vmem:[%s2639_s17 + $0x778] sm:$0xff] %v1400_v7  ;;  %v1402_v52 = vmul.f32 %v1146_v47, %v3976_v34  ;;  %v1148_v11 = vadd.f32 1.0, %v2313_v6  ;;  %2334 = vtanh.f32 %v4053_v63 }
 0x13a   : > { %v2317_v20 = vpop.eup %2316  ;;  %1657 = vst [vmem:[%s2639_s17 + $0x780] sm:$0xff] %v1401_v25  ;;  %v1403_v27 = vmul.f32 %v1147_v9, %v3982_v39  ;;  %v1149_v14 = vadd.f32 1.0, %v2315_v12  ;;  %2336 = vtanh.f32 %v4058_v23 }
 0x13b   : > { %v2319_v28 = vpop.eup %2318  ;;  %1658 = vst [vmem:[%s2639_s17 + $0x788] sm:$0xff] %v1402_v52  ;;  %v1404_v57 = vmul.f32 %v1148_v11, %v3988_v44  ;;  %v1150_v18 = vadd.f32 1.0, %v2317_v20 }
 0x13c   : > { %v2321_v29 = vpop.eup %2320  ;;  %1659 = vst [vmem:[%s2639_s17 + $0x790] sm:$0xff] %v1403_v27  ;;  %v1405_v34 = vmul.f32 %v1149_v14, %v3994_v49  ;;  %v1151_v22 = vadd.f32 1.0, %v2319_v28 }
 0x13d   : > { %v2323_v62 = vpop.eup %2322  ;;  %1660 = vst [vmem:[%s2639_s17 + $0x798] sm:$0xff] %v1404_v57  ;;  %v1406_v39 = vmul.f32 %v1150_v18, %v4000_v54  ;;  %v1152_v26 = vadd.f32 1.0, %v2321_v29 }
 0x13e   : > { %v2325_v32 = vpop.eup %2324  ;;  %1661 = vst [vmem:[%s2639_s17 + $0x7a0] sm:$0xff] %v1405_v34  ;;  %v1407_v30 = vmul.f32 %v1151_v22, %v4006_v59  ;;  %v1153_v3 = vadd.f32 1.0, %v2323_v62 }
 0x13f   : > { %v2327_v44 = vpop.eup %2326  ;;  %1662 = vst [vmem:[%s2639_s17 + $0x7a8] sm:$0xff] %v1406_v39  ;;  %v1408_v33 = vmul.f32 %v1152_v26, %v4012_v0  ;;  %v1154_v36 = vadd.f32 1.0, %v2325_v32 }
 0x140   : > { %v2329_v49 = vpop.eup %2328  ;;  %1663 = vst [vmem:[%s2639_s17 + $0x7b0] sm:$0xff] %v1407_v30  ;;  %v1409_v35 = vmul.f32 %v1153_v3, %v4018_v5  ;;  %v1155_v54 = vadd.f32 1.0, %v2327_v44 }
 0x141   : > { %v2331_v8 = vpop.eup %2330  ;;  %1664 = vst [vmem:[%s2639_s17 + $0x7b8] sm:$0xff] %v1408_v33  ;;  %v1410_v38 = vmul.f32 %v1154_v36, %v4024_v10  ;;  %v1156_v59 = vadd.f32 1.0, %v2329_v49 }
 0x142   : > { %v2333_v40 = vpop.eup %2332  ;;  %1665 = vst [vmem:[%s2639_s17 + $0x7c0] sm:$0xff] %v1409_v35  ;;  %v1411_v0 = vmul.f32 %v1155_v54, %v4030_v16  ;;  %v1157_v41 = vadd.f32 1.0, %v2331_v8 }
 0x143   : > { %v2335_v13 = vpop.eup %2334  ;;  %1666 = vst [vmem:[%s2639_s17 + $0x7c8] sm:$0xff] %v1410_v38  ;;  %v1412_v43 = vmul.f32 %v1156_v59, %v4036_v24  ;;  %v1158_v5 = vadd.f32 1.0, %v2333_v40 }
 0x144   : > { %v2337_v10 = vpop.eup %2336  ;;  %1667 = vst [vmem:[%s2639_s17 + $0x7d0] sm:$0xff] %v1411_v0  ;;  %v1413_v45 = vmul.f32 %v1157_v41, %v4042_v31  ;;  %v1159_v46 = vadd.f32 1.0, %v2335_v13 }
 0x145   : > { %1668 = vst [vmem:[%s2639_s17 + $0x7d8] sm:$0xff] %v1412_v43  ;;  %v1414_v16 = vmul.f32 %v1158_v5, %v4048_v37  ;;  %v1160_v15 = vadd.f32 1.0, %v2337_v10 }
 0x146   : > { %1669 = vst [vmem:[%s2639_s17 + $0x7e0] sm:$0xff] %v1413_v45  ;;  %v1415_v48 = vmul.f32 %v1159_v46, %v4053_v63 }
 0x147   : > { %1670 = vst [vmem:[%s2639_s17 + $0x7e8] sm:$0xff] %v1414_v16  ;;  %v1416_v24 = vmul.f32 %v1160_v15, %v4058_v23 }
 0x148   : > { %1671 = vst [vmem:[%s2639_s17 + $0x7f0] sm:$0xff] %v1415_v48 }
 0x149   : > { %1672 = vst [vmem:[%s2639_s17 + $0x7f8] sm:$0xff] %v1416_v24 }
 0x14a   : > { %2381 = shalt.err (!%p2378_p2)
}
 0x14b   : > { %s2382_s13 = scalar_lea.hbm %s4101_s10, 32768  ;;  %s2386_s20 = scalar_lea.hbm %s4152_s1, 65536 }
 0x14c   : > { %p2383_p4 = scmp.ne.s32.totalorder %s4101_s10, %s2382_s13  ;;  %p2387_p9 = scmp.lt.u32.totalorder %s4101_s10, %s4152_s1 }
 0x14d   : > { %p2388_p1 = scmp.lt.u32.totalorder %s2386_s20, %s2382_s13  ;;  %p2390_p6 = scmp.lt.u32.totalorder %s2382_s13, %s4101_s10 }
 0x14e   : > { %p2384_p5 = pnand %p2383_p4, %p4159_p11 }
 0x14f   : > { %p2389_p3 = por %p2388_p1, %p2387_p9 }
 0x150   : > { %p2385_p7 = pneg %p2384_p5 }
 0x151   : > { %p2391_p12 = por %p2390_p6, %p2389_p3 }
 0x153   : > { %p2392_p13 = pnand %p2391_p12, %p2385_p7 }
 0x155   : > { %2395 = shalt.err (!%p2392_p13)
}
 0x156   : > { %s2440_s24 = smov 128   ;;  %s2441_s26 = smov 8  }
 0x157   : > { %1778 = dma.vmem_to_hbm [thread:$0]  (%p4159_p11), %s4103_s27, 32768, %s4101_s10, %s1674_s2, %s2440_s24, %s2440_s24, %s2441_s26  }
 0x158 PF: > { %s1702_s30 = sand.u32 1, %s2422_s6   ;;  %p4160_p8 = scmp.ne.s32.totalorder %s4157_s19, 0 }
 0x159   : > { %p4161_p10 = scmp.ge.s32.totalorder %s2434_s9, 2  ;;  %s1703_s17 = scalar_lea.sflag [#allocation4], %s1702_s30 }
 0x15b   : > { %p1785_p0 = pnand %p4161_p10, %p4160_p8 }
 0x15d   : > { %2417 = dma.done.wait (!%p1785_p0), %s1703_s17, 32768  }
 0x15e   : > { %2419 = vsyncadd (!%p1785_p0), %s1703_s17, 4294934528  ;;  %p14_p2 = scmp.ge.s32.totalorder %s2477_s12, 4   ;;  %s4162_s6 = smov %s2426_s7 }
 0x15f   : > { %s4163_s7 = smov %s2430_s8  ;;  %s4164_s8 = smov %s2489_s15 }
 0x160   : > { %s4165_s9 = smov %s2477_s12  ;;  %16 = sbr.rel (!%p14_p2) target bundleno = 5 (0x5), region = 69 }
 0x167   :  { %1708 = vsyncpa [#allocation3], 1 }
 0x168   :  { %1710 = vsyncpa [#allocation3 + $0x1], 1 }
 0x169   :  { %1711 = vsyncpa [#allocation4], 1 }
 0x16a   :  { %1713 = vsyncpa [#allocation4 + $0x1], 1 }

</bundles_post_ra>
